<compile_context>
chip_gen: v7x
topology: tpu7x:2x2x1
jax: 0.10.0
libtpu: 0.0.40
codegen_flags: <defaults>
</compile_context>

<pallas_src>
import functools
import math

import jax
import jax.numpy as jnp
from jax.experimental import pallas as pl
from jax.experimental.pallas import tpu as pltpu

_LANE = 128


def _round_up(x, m):
    return (x + m - 1) // m * m


def _backbone_kernel(x_ref, conv_w_ref, conv_b_ref, dec_w_ref, dec_b_ref,
                     out_ref, patch_scr, *, row_tile):
    """One padded image per grid step.

    x_ref     : (1, H+2, W+2, Cin)  f32   spatially padded NHWC image
    conv_w_ref: (Cin*9, Cfp)        bf16  3x3 conv weight, flattened, lane-padded
    conv_b_ref: (1, Cfp)            f32
    dec_w_ref : (Cfp, Mp)           bf16  decoder Linear weight (transposed, padded)
    dec_b_ref : (1, Mp)             f32
    out_ref   : (1, 1, Mp)          f32
    patch_scr : (row_tile*W, Cin*9) f32   VMEM scratch for in-kernel im2col
    """
    _, hp, wp, cin = x_ref.shape
    h_img = hp - 2
    w_img = wp - 2
    k = conv_w_ref.shape[0]            # cin * 9
    cfp = conv_w_ref.shape[1]
    th = row_tile
    n_chunks = h_img // th
    rows_per_chunk = th * w_img

    # Hoisted once per grid step (not re-materialized per chunk).
    conv_w = conv_w_ref[...]                                   # (K, Cfp) bf16
    conv_b = conv_b_ref[...]                                   # (1, Cfp) f32
    ones_row = jnp.ones((1, rows_per_chunk), jnp.float32)      # GAP via MXU

    def chunk_body(c, acc):
        r0 = c * th
        # TH+2 padded rows cover the three vertical taps of this chunk.
        rows = x_ref[0, pl.ds(r0, th + 2), :, :]               # (TH+2, W+2, Cin)
        # In-kernel im2col: write the 9 shifted taps into the scratch tile.
        for dh in range(3):
            for dw in range(3):
                t = dh * 3 + dw
                tap = rows[dh:dh + th, dw:dw + w_img, :]        # (TH, W, Cin)
                patch_scr[:, t * cin:(t + 1) * cin] = tap.reshape(
                    rows_per_chunk, cin)
        patch = patch_scr[...].astype(jnp.bfloat16)             # (TH*W, K)
        # 3x3 conv as a single MXU matmul (bf16 in, f32 accumulate).
        hconv = jnp.dot(patch, conv_w, preferred_element_type=jnp.float32)
        hconv = jnp.maximum(hconv + conv_b, 0.0)                # bias + ReLU (f32)
        # Partial global-average-pool sum, routed through the MXU.
        psum = jnp.dot(ones_row, hconv, preferred_element_type=jnp.float32)
        return acc + psum                                       # (1, Cfp) f32

    acc = jax.lax.fori_loop(0, n_chunks, chunk_body,
                            jnp.zeros((1, cfp), jnp.float32))

    feats = (acc * (1.0 / float(h_img * w_img))).astype(jnp.bfloat16)  # (1, Cfp)
    out = jnp.dot(feats, dec_w_ref[...],
                  preferred_element_type=jnp.float32) + dec_b_ref[...]  # (1, Mp)
    out_ref[...] = out.reshape(out_ref.shape).astype(out_ref.dtype)


def init_params(key, in_channels, img_feature_size, num_kpts):
    k1, k2, k3, k4 = jax.random.split(key, 4)
    K = in_channels * 9
    M = num_kpts * 2
    return {
        "conv_w": 0.1 * jax.random.normal(k1, (K, img_feature_size), jnp.float32),
        "conv_b": 0.1 * jax.random.normal(k2, (1, img_feature_size), jnp.float32),
        "dec_w": 0.1 * jax.random.normal(k3, (img_feature_size, M), jnp.float32),
        "dec_b": 0.1 * jax.random.normal(k4, (1, M), jnp.float32),
    }


@functools.partial(jax.jit, static_argnames=("num_kpts",))
def backbone_only_forward(x_nchw, params, *, num_kpts):
    """Equivalent of backbone_only.forward: returns (B, num_kpts, 2)."""
    B, C, H, W = x_nchw.shape
    K = C * 9
    Cf = params["conv_w"].shape[1]
    M = num_kpts * 2
    Cfp = _round_up(Cf, _LANE)
    Mp = _round_up(M, _LANE)
    hp, wp = H + 2, W + 2
    TH = math.gcd(H, 8)                 # row chunk size (divides H)

    # NCHW -> spatially padded NHWC.  No 9x im2col tensor ever hits HBM.
    x_nhwc = jnp.transpose(x_nchw.astype(jnp.float32), (0, 2, 3, 1))
    x_pad = jnp.pad(x_nhwc, ((0, 0), (1, 1), (1, 1), (0, 0)))

    # Lane-pad weights to multiples of 128; matmul operands bf16, biases f32.
    conv_w = jnp.pad(params["conv_w"], ((0, 0), (0, Cfp - Cf))).astype(jnp.bfloat16)
    conv_b = jnp.pad(params["conv_b"], ((0, 0), (0, Cfp - Cf))).astype(jnp.float32)
    dec_w = jnp.pad(params["dec_w"], ((0, Cfp - Cf), (0, Mp - M))).astype(jnp.bfloat16)
    dec_b = jnp.pad(params["dec_b"], ((0, 0), (0, Mp - M))).astype(jnp.float32)

    cost = pl.CostEstimate(
        flops=2 * B * H * W * (K * Cfp + Cfp) + 2 * B * Cfp * Mp,
        transcendentals=0,
        bytes_accessed=(x_pad.size * 4 + conv_w.size * 2 + dec_w.size * 2
                        + conv_b.size * 4 + dec_b.size * 4 + B * Mp * 4),
    )

    out = pl.pallas_call(
        functools.partial(_backbone_kernel, row_tile=TH),
        out_shape=jax.ShapeDtypeStruct((B, 1, Mp), jnp.float32),
        grid=(B,),
        in_specs=[
            pl.BlockSpec((1, hp, wp, C), lambda b: (b, 0, 0, 0)),
            pl.BlockSpec((K, Cfp), lambda b: (0, 0)),
            pl.BlockSpec((1, Cfp), lambda b: (0, 0)),
            pl.BlockSpec((Cfp, Mp), lambda b: (0, 0)),
            pl.BlockSpec((1, Mp), lambda b: (0, 0)),
        ],
        out_specs=pl.BlockSpec((1, 1, Mp), lambda b: (b, 0, 0)),
        scratch_shapes=[pltpu.VMEM((TH * W, K), jnp.float32)],
        compiler_params=pltpu.CompilerParams(
            dimension_semantics=("parallel",),
            vmem_limit_bytes=32 * 1024 * 1024,
        ),
        cost_estimate=cost,
    )(x_pad, conv_w, conv_b, dec_w, dec_b)

    return out[:, 0, :M].reshape(B, num_kpts, 2)


def _reference_forward(x_nchw, params, num_kpts):
    """Pure-JAX f32 reference (same tap/weight ordering as the kernel)."""
    B, C, H, W = x_nchw.shape
    xp = jnp.pad(x_nchw.astype(jnp.float32), ((0, 0), (0, 0), (1, 1), (1, 1)))
    taps = []
    for dh in range(3):
        for dw in range(3):
            taps.append(xp[:, :, dh:dh + H, dw:dw + W])        # (B, C, H, W)
    p = jnp.stack(taps, axis=1)                                # (B, 9, C, H, W)
    p = p.transpose(0, 3, 4, 1, 2).reshape(B, H * W, 9 * C)    # K = (dh*3+dw)*C + c
    h = jnp.maximum(jnp.einsum("bpk,kf->bpf", p, params["conv_w"])
                    + params["conv_b"][None], 0.0)
    feats = jnp.mean(h, axis=1)
    out = feats @ params["dec_w"] + params["dec_b"]
    return out.reshape(B, num_kpts, 2)


if __name__ == "__main__":
    key = jax.random.PRNGKey(0)
    k_x, k_p = jax.random.split(key)

    # small shapes: batch=2, channels=4, spatial=16x16, feature size 32, 8 kpts
    B, C, H, W = 2, 4, 16, 16
    img_feature_size = 32
    num_kpts = 8

    x = jax.random.normal(k_x, (B, C, H, W), jnp.float32)      # NCHW, like PyTorch
    params = init_params(k_p, C, img_feature_size, num_kpts)

    kpts = backbone_only_forward(x, params, num_kpts=num_kpts)
    kpts = jax.block_until_ready(kpts)

    assert kpts.shape == (B, num_kpts, 2), kpts.shape
    assert kpts.dtype == jnp.float32

    ref = _reference_forward(x, params, num_kpts)
    max_err = float(jnp.max(jnp.abs(kpts - ref)))
    assert max_err < 5e-2, f"max abs error vs reference: {max_err}"

    print("KERNEL_OK")
</pallas_src>

<mosaic_0001>
module attributes {stable_mosaic.version = 11 : i64} {
  func.func @_backbone_kernel(%arg0: i32, %arg1: memref<1x18x18x4xf32, #tpu.memory_space<vmem>>, %arg2: memref<36x128xbf16, #tpu.memory_space<vmem>>, %arg3: memref<1x128xf32, #tpu.memory_space<vmem>>, %arg4: memref<128x128xbf16, #tpu.memory_space<vmem>>, %arg5: memref<1x128xf32, #tpu.memory_space<vmem>>, %arg6: memref<1x1x128xf32, #tpu.memory_space<vmem>>, %arg7: memref<128x36xf32, #tpu.memory_space<vmem>>) attributes {dimension_semantics = [#tpu.dimension_semantics<parallel>], iteration_bounds = array<i64: 2>, scalar_prefetch = 0 : i64, scratch_operands = 1 : i64, tpu.core_type = #tpu.core_type<tc>, window_params = [{transform_indices = @transform_0, window_bounds = array<i64: 1, 18, 18, 4>}, {pipeline_mode = #tpu.pipeline_mode<synchronous>, transform_indices = @transform_1, window_bounds = array<i64: 36, 128>}, {pipeline_mode = #tpu.pipeline_mode<synchronous>, transform_indices = @transform_2, window_bounds = array<i64: 1, 128>}, {pipeline_mode = #tpu.pipeline_mode<synchronous>, transform_indices = @transform_3, window_bounds = array<i64: 128, 128>}, {pipeline_mode = #tpu.pipeline_mode<synchronous>, transform_indices = @transform_4, window_bounds = array<i64: 1, 128>}, {transform_indices = @transform_5, window_bounds = array<i64: 1, 1, 128>}]} {
    %c0 = arith.constant 0 : index
    %c0_0 = arith.constant 0 : index
    %0 = vector.load %arg2[%c0, %c0_0] : memref<36x128xbf16, #tpu.memory_space<vmem>>, vector<36x128xbf16>
    %c0_1 = arith.constant 0 : index
    %c0_2 = arith.constant 0 : index
    %1 = vector.load %arg3[%c0_1, %c0_2] : memref<1x128xf32, #tpu.memory_space<vmem>>, vector<1x128xf32>
    %cst = arith.constant 1.000000e+00 : f32
    %2 = vector.broadcast %cst : f32 to vector<1x128xf32>
    %cst_3 = arith.constant 0.000000e+00 : f32
    %3 = vector.broadcast %cst_3 : f32 to vector<1x128xf32>
    %c0_i32 = arith.constant 0 : i32
    %c2_i32 = arith.constant 2 : i32
    %4 = arith.addi %c0_i32, %c2_i32 : i32
    %c1_i32 = arith.constant 1 : i32
    %5 = scf.for %arg8 = %c0_i32 to %4 step %c1_i32 iter_args(%arg9 = %3) -> (vector<1x128xf32>)  : i32 {
      %c8_i32 = arith.constant 8 : i32
      %15 = arith.muli %arg8, %c8_i32 : i32
      %c0_14 = arith.constant 0 : index
      %16 = arith.index_cast %15 : i32 to index
      %c0_15 = arith.constant 0 : index
      %c0_16 = arith.constant 0 : index
      %17 = vector.load %arg1[%c0_14, %16, %c0_15, %c0_16] : memref<1x18x18x4xf32, #tpu.memory_space<vmem>>, vector<1x10x18x4xf32>
      %18 = vector.shape_cast %17 : vector<1x10x18x4xf32> to vector<10x18x4xf32>
      %19 = vector.extract_strided_slice %18 {offsets = [0, 0, 0], sizes = [8, 16, 4], strides = [1, 1, 1]} : vector<10x18x4xf32> to vector<8x16x4xf32>
      %20 = vector.shape_cast %19 : vector<8x16x4xf32> to vector<128x4xf32>
      %c0_17 = arith.constant 0 : index
      %c0_18 = arith.constant 0 : index
      %21 = vector.load %arg7[%c0_17, %c0_18] : memref<128x36xf32, #tpu.memory_space<vmem>>, vector<128x4xf32>
      tpu.vector_store %arg7[%c0_17, %c0_18], %20 {strides = array<i32>} : memref<128x36xf32, #tpu.memory_space<vmem>>, vector<128x4xf32>,
      %22 = vector.extract_strided_slice %18 {offsets = [0, 1, 0], sizes = [8, 16, 4], strides = [1, 1, 1]} : vector<10x18x4xf32> to vector<8x16x4xf32>
      %23 = vector.shape_cast %22 : vector<8x16x4xf32> to vector<128x4xf32>
      %c0_19 = arith.constant 0 : index
      %c4 = arith.constant 4 : index
      %24 = vector.load %arg7[%c0_19, %c4] : memref<128x36xf32, #tpu.memory_space<vmem>>, vector<128x4xf32>
      tpu.vector_store %arg7[%c0_19, %c4], %23 {strides = array<i32>} : memref<128x36xf32, #tpu.memory_space<vmem>>, vector<128x4xf32>,
      %25 = vector.extract_strided_slice %18 {offsets = [0, 2, 0], sizes = [8, 16, 4], strides = [1, 1, 1]} : vector<10x18x4xf32> to vector<8x16x4xf32>
      %26 = vector.shape_cast %25 : vector<8x16x4xf32> to vector<128x4xf32>
      %c0_20 = arith.constant 0 : index
      %c8 = arith.constant 8 : index
      %27 = vector.load %arg7[%c0_20, %c8] : memref<128x36xf32, #tpu.memory_space<vmem>>, vector<128x4xf32>
      tpu.vector_store %arg7[%c0_20, %c8], %26 {strides = array<i32>} : memref<128x36xf32, #tpu.memory_space<vmem>>, vector<128x4xf32>,
      %28 = vector.extract_strided_slice %18 {offsets = [1, 0, 0], sizes = [8, 16, 4], strides = [1, 1, 1]} : vector<10x18x4xf32> to vector<8x16x4xf32>
      %29 = vector.shape_cast %28 : vector<8x16x4xf32> to vector<128x4xf32>
      %c0_21 = arith.constant 0 : index
      %c12 = arith.constant 12 : index
      %30 = vector.load %arg7[%c0_21, %c12] : memref<128x36xf32, #tpu.memory_space<vmem>>, vector<128x4xf32>
      tpu.vector_store %arg7[%c0_21, %c12], %29 {strides = array<i32>} : memref<128x36xf32, #tpu.memory_space<vmem>>, vector<128x4xf32>,
      %31 = vector.extract_strided_slice %18 {offsets = [1, 1, 0], sizes = [8, 16, 4], strides = [1, 1, 1]} : vector<10x18x4xf32> to vector<8x16x4xf32>
      %32 = vector.shape_cast %31 : vector<8x16x4xf32> to vector<128x4xf32>
      %c0_22 = arith.constant 0 : index
      %c16 = arith.constant 16 : index
      %33 = vector.load %arg7[%c0_22, %c16] : memref<128x36xf32, #tpu.memory_space<vmem>>, vector<128x4xf32>
      tpu.vector_store %arg7[%c0_22, %c16], %32 {strides = array<i32>} : memref<128x36xf32, #tpu.memory_space<vmem>>, vector<128x4xf32>,
      %34 = vector.extract_strided_slice %18 {offsets = [1, 2, 0], sizes = [8, 16, 4], strides = [1, 1, 1]} : vector<10x18x4xf32> to vector<8x16x4xf32>
      %35 = vector.shape_cast %34 : vector<8x16x4xf32> to vector<128x4xf32>
      %c0_23 = arith.constant 0 : index
      %c20 = arith.constant 20 : index
      %36 = vector.load %arg7[%c0_23, %c20] : memref<128x36xf32, #tpu.memory_space<vmem>>, vector<128x4xf32>
      tpu.vector_store %arg7[%c0_23, %c20], %35 {strides = array<i32>} : memref<128x36xf32, #tpu.memory_space<vmem>>, vector<128x4xf32>,
      %37 = vector.extract_strided_slice %18 {offsets = [2, 0, 0], sizes = [8, 16, 4], strides = [1, 1, 1]} : vector<10x18x4xf32> to vector<8x16x4xf32>
      %38 = vector.shape_cast %37 : vector<8x16x4xf32> to vector<128x4xf32>
      %c0_24 = arith.constant 0 : index
      %c24 = arith.constant 24 : index
      %39 = vector.load %arg7[%c0_24, %c24] : memref<128x36xf32, #tpu.memory_space<vmem>>, vector<128x4xf32>
      tpu.vector_store %arg7[%c0_24, %c24], %38 {strides = array<i32>} : memref<128x36xf32, #tpu.memory_space<vmem>>, vector<128x4xf32>,
      %40 = vector.extract_strided_slice %18 {offsets = [2, 1, 0], sizes = [8, 16, 4], strides = [1, 1, 1]} : vector<10x18x4xf32> to vector<8x16x4xf32>
      %41 = vector.shape_cast %40 : vector<8x16x4xf32> to vector<128x4xf32>
      %c0_25 = arith.constant 0 : index
      %c28 = arith.constant 28 : index
      %42 = vector.load %arg7[%c0_25, %c28] : memref<128x36xf32, #tpu.memory_space<vmem>>, vector<128x4xf32>
      tpu.vector_store %arg7[%c0_25, %c28], %41 {strides = array<i32>} : memref<128x36xf32, #tpu.memory_space<vmem>>, vector<128x4xf32>,
      %43 = vector.extract_strided_slice %18 {offsets = [2, 2, 0], sizes = [8, 16, 4], strides = [1, 1, 1]} : vector<10x18x4xf32> to vector<8x16x4xf32>
      %44 = vector.shape_cast %43 : vector<8x16x4xf32> to vector<128x4xf32>
      %c0_26 = arith.constant 0 : index
      %c32 = arith.constant 32 : index
      %45 = vector.load %arg7[%c0_26, %c32] : memref<128x36xf32, #tpu.memory_space<vmem>>, vector<128x4xf32>
      tpu.vector_store %arg7[%c0_26, %c32], %44 {strides = array<i32>} : memref<128x36xf32, #tpu.memory_space<vmem>>, vector<128x4xf32>,
      %c0_27 = arith.constant 0 : index
      %c0_28 = arith.constant 0 : index
      %46 = vector.load %arg7[%c0_27, %c0_28] : memref<128x36xf32, #tpu.memory_space<vmem>>, vector<128x36xf32>
      %47 = arith.truncf %46 : vector<128x36xf32> to vector<128x36xbf16>
      %cst_29 = arith.constant dense<0.000000e+00> : vector<128x128xf32>
      %48 = tpu.matmul %47, %0, %cst_29 {dimension_numbers = #tpu.dot_dimension_numbers<[1], [0], [0], [1], [0, 0, 1, 1], [], []>} : vector<128x36xbf16>, vector<36x128xbf16>, vector<128x128xf32> -> vector<128x128xf32>
      %49 = vector.broadcast %1 : vector<1x128xf32> to vector<128x128xf32>
      %50 = arith.addf %48, %49 : vector<128x128xf32>
      %cst_30 = arith.constant 0.000000e+00 : f32
      %51 = vector.broadcast %cst_30 : f32 to vector<128x128xf32>
      %52 = arith.maximumf %50, %51 : vector<128x128xf32>
      %cst_31 = arith.constant dense<0.000000e+00> : vector<1x128xf32>
      %53 = tpu.matmul %2, %52, %cst_31 {dimension_numbers = #tpu.dot_dimension_numbers<[1], [0], [0], [1], [0, 0, 1, 1], [], []>} : vector<1x128xf32>, vector<128x128xf32>, vector<1x128xf32> -> vector<1x128xf32>
      %54 = arith.addf %arg9, %53 : vector<1x128xf32>
      scf.yield %54 : vector<1x128xf32>
    }
    %c2_i32_4 = arith.constant 2 : i32
    %cst_5 = arith.constant 3.906250e-03 : f32
    %6 = vector.broadcast %cst_5 : f32 to vector<1x128xf32>
    %7 = arith.mulf %5, %6 : vector<1x128xf32>
    %8 = arith.truncf %7 : vector<1x128xf32> to vector<1x128xbf16>
    %c0_6 = arith.constant 0 : index
    %c0_7 = arith.constant 0 : index
    %9 = vector.load %arg4[%c0_6, %c0_7] : memref<128x128xbf16, #tpu.memory_space<vmem>>, vector<128x128xbf16>
    %cst_8 = arith.constant dense<0.000000e+00> : vector<1x128xf32>
    %10 = tpu.matmul %8, %9, %cst_8 {dimension_numbers = #tpu.dot_dimension_numbers<[1], [0], [0], [1], [0, 0, 1, 1], [], []>} : vector<1x128xbf16>, vector<128x128xbf16>, vector<1x128xf32> -> vector<1x128xf32>
    %c0_9 = arith.constant 0 : index
    %c0_10 = arith.constant 0 : index
    %11 = vector.load %arg5[%c0_9, %c0_10] : memref<1x128xf32, #tpu.memory_space<vmem>>, vector<1x128xf32>
    %12 = arith.addf %10, %11 : vector<1x128xf32>
    %13 = vector.shape_cast %12 : vector<1x128xf32> to vector<1x1x128xf32>
    %c0_11 = arith.constant 0 : index
    %c0_12 = arith.constant 0 : index
    %c0_13 = arith.constant 0 : index
    %14 = vector.load %arg6[%c0_11, %c0_12, %c0_13] : memref<1x1x128xf32, #tpu.memory_space<vmem>>, vector<1x1x128xf32>
    tpu.vector_store %arg6[%c0_11, %c0_12, %c0_13], %13 {strides = array<i32>} : memref<1x1x128xf32, #tpu.memory_space<vmem>>, vector<1x1x128xf32>,
    return
  }
  func.func @transform_0(%arg0: i32) -> (i32, i32, i32, i32) {
    %c0_i32 = arith.constant 0 : i32
    %c0_i32_0 = arith.constant 0 : i32
    %c0_i32_1 = arith.constant 0 : i32
    %c0_i32_2 = arith.constant 0 : i32
    return %arg0, %c0_i32, %c0_i32_0, %c0_i32_1 : i32, i32, i32, i32
  }
  func.func @transform_1(%arg0: i32) -> (i32, i32) {
    %c0_i32 = arith.constant 0 : i32
    %c0_i32_0 = arith.constant 0 : i32
    %c0_i32_1 = arith.constant 0 : i32
    return %c0_i32, %c0_i32_0 : i32, i32
  }
  func.func @transform_2(%arg0: i32) -> (i32, i32) {
    %c0_i32 = arith.constant 0 : i32
    %c0_i32_0 = arith.constant 0 : i32
    %c0_i32_1 = arith.constant 0 : i32
    return %c0_i32, %c0_i32_0 : i32, i32
  }
  func.func @transform_3(%arg0: i32) -> (i32, i32) {
    %c0_i32 = arith.constant 0 : i32
    %c0_i32_0 = arith.constant 0 : i32
    %c0_i32_1 = arith.constant 0 : i32
    return %c0_i32, %c0_i32_0 : i32, i32
  }
  func.func @transform_4(%arg0: i32) -> (i32, i32) {
    %c0_i32 = arith.constant 0 : i32
    %c0_i32_0 = arith.constant 0 : i32
    %c0_i32_1 = arith.constant 0 : i32
    return %c0_i32, %c0_i32_0 : i32, i32
  }
  func.func @transform_5(%arg0: i32) -> (i32, i32, i32) {
    %c0_i32 = arith.constant 0 : i32
    %c0_i32_0 = arith.constant 0 : i32
    %c0_i32_1 = arith.constant 0 : i32
    return %arg0, %c0_i32, %c0_i32_0 : i32, i32, i32
  }
}

</mosaic_0001>

<bundles_post_ra>
// kernel: squeeze.1
= control target key start
LH: loop header
LB: loop body
LE: loop exit
PB: predicated region body
PF: predicated region fallthrough
CT: control target
= control target key end

     0   :  { %s66_s8 = smov 122   ;;  %vm7_vm0 = vcmask 15360   ;;  %s67_s11 = smov 124   ;;  %s117_s0 = inlined_call_operand.vmem [shape: f32[2,16], index: 0, kind: input, shape index: {}]   ;;  %s118_s1 = inlined_call_operand.vmem [shape: f32[2,8,2], index: 1, kind: output, shape index: {}]  }
   0x1   :  { %v4_v0 = vld [vmem:[%s117_s0] sm:$0x3]  ;;  %s65_s0 = smov 126   ;;  %s68_s12 = smov 120  }
   0x2   :  { %5 = vst [vmem:[#allocation0] sm:$0x3] %v4_v0  ;;  %s69_s13 = smov 118   ;;  %s70_s14 = smov 116  }
   0x3   :  { %s71_s15 = smov 114  }
   0x9   :  { %v9_v1 = vld [vmem:[#allocation0] sm:$0x3]  }
   0xa   :  { %v21_v2 = vld [vmem:[#allocation0] sm:$0x3]   ;;  %10 = vrot.lane.b32.xlu0 %v9_v1, %s65_s0 }
   0xb   :  { %22 = vrot.lane.b32.xlu1 %v21_v2, %s66_s8  ;;  %v15_v3 = vld [vmem:[#allocation0] sm:$0x3]  }
   0xc   :  { %v27_v4 = vld [vmem:[#allocation0] sm:$0x3]  }
   0xd   :  { %v6_v5 = vld [vmem:[#allocation0] sm:$0x3]  }
   0xe   :  { %8 = vst.msk [vmem:[%s118_s1] ss:$8 sm:$0x3] %vm7_vm0, %v6_v5   ;;  %16 = vrot.lane.b32.xlu0 %v15_v3, %s67_s11  ;;  %v33_v6 = vld [vmem:[#allocation0] sm:$0x3]  }
   0xf   :  { %28 = vrot.lane.b32.xlu1 %v27_v4, %s68_s12  ;;  %v39_v7 = vld [vmem:[#allocation0] sm:$0x3]  }
  0x10   :  { %v45_v8 = vld [vmem:[#allocation0] sm:$0x3]  }
  0x12   :  { %34 = vrot.lane.b32.xlu0 %v33_v6, %s69_s13 }
  0x13   :  { %40 = vrot.lane.b32.xlu1 %v39_v7, %s70_s14 }
  0x16   :  { %46 = vrot.lane.b32.xlu0 %v45_v8, %s71_s15 }
  0x7c   :  { %v11_v9 = vpop.permute.xlu0 %10  }
  0x7d   :  { %v23_v10 = vpop.permute.xlu1 %22   ;;  %51 = vst.msk [vmem:[%s118_s1 + $0x1] ss:$8 sm:$0x3] %vm7_vm0, %v11_v9  }
  0x7e   :  { %53 = vst.msk [vmem:[%s118_s1 + $0x3] ss:$8 sm:$0x3] %vm7_vm0, %v23_v10  }
  0x80   :  { %v17_v11 = vpop.permute.xlu0 %16  }
  0x81   :  { %v29_v12 = vpop.permute.xlu1 %28   ;;  %52 = vst.msk [vmem:[%s118_s1 + $0x2] ss:$8 sm:$0x3] %vm7_vm0, %v17_v11  }
  0x82   :  { %54 = vst.msk [vmem:[%s118_s1 + $0x4] ss:$8 sm:$0x3] %vm7_vm0, %v29_v12  }
  0x84   :  { %v35_v13 = vpop.permute.xlu0 %34  }
  0x85   :  { %v41_v14 = vpop.permute.xlu1 %40   ;;  %55 = vst.msk [vmem:[%s118_s1 + $0x5] ss:$8 sm:$0x3] %vm7_vm0, %v35_v13  }
  0x86   :  { %56 = vst.msk [vmem:[%s118_s1 + $0x6] ss:$8 sm:$0x3] %vm7_vm0, %v41_v14  }
  0x88   :  { %v47_v15 = vpop.permute.xlu0 %46  }
  0x89   :  { %57 = vst.msk [vmem:[%s118_s1 + $0x7] ss:$8 sm:$0x3] %vm7_vm0, %v47_v15  }

// kernel: backbone_only_forward.1
= control target key start
LH: loop header
LB: loop body
LE: loop exit
PB: predicated region body
PF: predicated region fallthrough
CT: control target
= control target key end

     0   :  { %s1644_s18 = smov 0   ;;  %s2273_s0 = inlined_call_operand.vmem [shape: f32[2,18,18,4], index: 0, kind: input, shape index: {}]   ;;  %s2274_s1 = inlined_call_operand.vmem [shape: bf16[36,128], index: 1, kind: input, shape index: {}]   ;;  %s2275_s2 = inlined_call_operand.vmem [shape: f32[1,128], index: 2, kind: input, shape index: {}]   ;;  %s2276_s3 = inlined_call_operand.vmem [shape: bf16[128,128], index: 3, kind: input, shape index: {}]   ;;  %s2277_s4 = inlined_call_operand.vmem [shape: f32[1,128], index: 4, kind: input, shape index: {}]   ;;  %s2278_s5 = inlined_call_operand.vmem [shape: f32[2,1,128], index: 5, kind: output, shape index: {}]  }
   0x1 LB: > { %s1360_s19 = sadd.s32 4294967295, %s1590_s18   ;;  %p1364_p0 = scmp.ge.s32.totalorder %s1590_s18, 1  ;;  %s1590_s18 = sphi %s1644_s18, %s15_s18  }
   0x2   : > { %p187_p1 = scmp.lt.s32.totalorder %s1590_s18, 3 }
   0x4   : > { %p188_p2 = pnand %p1364_p0, %p187_p1 }
   0x5   : > { %p213_p3 = scmp.lt.s32.totalorder (!%p188_p2), %s1360_s19, 1  ;;  %v1655_v0 = vld [vmem:[%s2274_s1] sm:$0xf] (!%p188_p2)  ;;  %v1660_v1 = vld [vmem:[%s2274_s1 + $0x4] sm:$0xf] (!%p188_p2)  ;;  %v1694_v6 = vmov (!%p188_p2), 0.0  }
   0x6   : > { %191 = sbr.rel (%p188_p2) target bundleno = 1088 (0x440), region = 40  ;;  %v1665_v2 = vld [vmem:[%s2274_s1 + $0x8] sm:$0xf] (!%p188_p2)  ;;  %v1670_v3 = vld [vmem:[%s2274_s1 + $0xc] sm:$0xf] (!%p188_p2)  ;;  %s1696_s14 = smov (!%p188_p2), 0  }
   0x7   : > { %v1675_v4 = vld [vmem:[%s2274_s1 + $0x10] sm:$0x3] (!%p188_p2)  ;;  %v1682_v5 = vld [vmem:[%s2275_s2] ss:$0 sm:$0xff] (!%p188_p2) }
   0xd   : > { %s2281_s19 = smov (!%p213_p3, %s1360_s19), 1 }
   0xe   : > { %s1529_s7 = smul.u32 432, %s2281_s19  ;;  %s220_s10 = scalar_lea.vmem %s2278_s5, %s2281_s19 }
  0x10   : > { %s1692_s13 = scalar_lea.vmem %s2273_s0, %s1529_s7 }
  0x11 LB: >> { %s1367_s15 = smul.u32 192, %s1598_s14  ;;  %vm268_vm0 = vcmask 31744   ;;  %vm309_vm1 = vcmask 1046528   ;;  %s1600_s17 = smov 4   ;;  %vm415_vm2 = vcmask 1045504   ;;  %v1369_v60 = vcombine.low %v1655_v0, %v1660_v1  ;;  %s1598_s14 = sphi %s1696_s14, %s233_s14   ;;  %v1594_v6 = vphi %v1694_v6, %v2279_v6  }
  0x12   : >> { %s1601_s20 = smov 8   ;;  %s1602_s21 = smov 12   ;;  %v1370_v63 = vcombine.low %v1665_v2, %v1670_v3  ;;  %vm1007_vm3 = vcmask 1041408   ;;  %vm398_vm4 = vcmask 64544   ;;  %vm504_vm5 = vcmask 97344  }
  0x13   : >> { %s1706_s16 = scalar_lea.vmem %s1692_s13, %s1367_s15  ;;  %s1603_s22 = smov 16   ;;  %1427 = vmatprep.subr.bf16.mxu0 %v1369_v60  ;;  %vm571_vm6 = vcmask 130144   ;;  %vm642_vm7 = vcmask 162944   ;;  %vm712_vm8 = vcmask 195744   ;;  %vm779_vm9 = vcmask 228544  }
  0x14   : >> { %v241_v7 = vld [vmem:[%s1706_s16 + $0x18] sm:$0xff]  ;;  %v242_v8 = vld [vmem:[%s1706_s16 + $0x20] sm:$0xff]  ;;  %v239_v12 = vld [vmem:[%s1706_s16 + $0x8] sm:$0xff]  ;;  %s1604_s23 = smov 20   ;;  %s1605_s24 = smov 24   ;;  %1428 = vmatpush3.bf16.msra.mxu0 %v1369_v60  ;;  %vm850_vm10 = vcmask 261344  }
  0x15   : >> { %v238_v9 = vld [vmem:[%s1706_s16] sm:$0xff]  ;;  %v315_v10 = vrot.slane %v241_v7, 1  ;;  %v316_v11 = vrot.slane %v242_v8, 1  ;;  %v243_v14 = vld [vmem:[%s1706_s16 + $0x28] sm:$0x3]  ;;  %271 = vst.msk [vmem:[#allocation2 + $0x10] sm:$0xff] %vm268_vm0, %v241_v7  ;;  %1429 = vmatprep.subr.bf16.mxu0 %v1370_v63 }
  0x16   : >> { %v310_v13 = vrot.slane %v238_v9, 1  ;;  %269 = vst.msk [vmem:[#allocation2] sm:$0xff] %vm268_vm0, %v238_v9  ;;  %272 = vst.msk [vmem:[#allocation2 + $0x18] sm:$0xff] %vm268_vm0, %v242_v8  ;;  %v311_v15 = vrot.slane %v239_v12, 1  ;;  %v318_v16 = vrot.slane %v243_v14, 1  ;;  %v1720_v20 = vld [vmem:[%s1706_s16 + $0x38] sm:$0xff] }
  0x17   : >> { %v240_v17 = vld [vmem:[%s1706_s16 + $0x10] sm:$0x3]  ;;  %270 = vst.msk [vmem:[#allocation2 + $0x8] sm:$0xff] %vm268_vm0, %v239_v12  ;;  %v317_v18 = vsel %vm309_vm1, %v315_v10, %v316_v11  ;;  %v1731_v24 = vld [vmem:[%s1706_s16 + $0x48] sm:$0xff]  ;;  %274 = vst.msk [vmem:[#allocation2 + $0x28] sm:$0xff] %vm268_vm0, %v1720_v20  ;;  %v417_v26 = vrot.slane %v239_v12, 2 }
  0x18   : >> { %v313_v19 = vrot.slane %v240_v17, 1  ;;  %v1723_v21 = vld [vmem:[%s1706_s16 + $0x30] sm:$0xff]  ;;  %354 = vrot.lane.b32.xlu1 %v317_v18, %s1600_s17  ;;  %v312_v23 = vsel %vm309_vm1, %v310_v13, %v311_v15  ;;  %v319_v25 = vsel %vm309_vm1, %v316_v11, %v318_v16  ;;  %v419_v27 = vrot.slane %v240_v17, 2  ;;  %v1742_v28 = vld [vmem:[%s1706_s16 + $0x68] sm:$0xff]  ;;  %v1745_v29 = vld [vmem:[%s1706_s16 + $0x60] sm:$0xff]  ;;  %275 = vst.msk [vmem:[#allocation2 + $0x30] sm:$0xff] %vm268_vm0, %v1731_v24  ;;  %1430 = vmatpush3.bf16.msra.mxu0 %v1370_v63 }
  0x19   : >> { %v1726_v22 = vld [vmem:[%s1706_s16 + $0x50] sm:$0xff]  ;;  %273 = vst.msk [vmem:[#allocation2 + $0x20] sm:$0xff] %vm268_vm0, %v1723_v21  ;;  %350 = vrot.lane.b32.xlu0 %v312_v23, %s1600_s17  ;;  %v416_v31 = vrot.slane %v238_v9, 2  ;;  %v1751_v32 = vld [vmem:[%s1706_s16 + $0x80] sm:$0xff]  ;;  %v1754_v33 = vld [vmem:[%s1706_s16 + $0x78] sm:$0xff]  ;;  %v422_v35 = vrot.slane %v242_v8, 2 }
  0x1a   : >> { %276 = vst.msk [vmem:[#allocation2 + $0x38] sm:$0xff] %vm268_vm0, %v1726_v22  ;;  %v314_v30 = vsel %vm309_vm1, %v311_v15, %v313_v19  ;;  %277 = vst.msk [vmem:[#allocation2 + $0x40] sm:$0xff] %vm268_vm0, %v1745_v29  ;;  %v420_v34 = vsel %vm415_vm2, %v417_v26, %v419_v27  ;;  %v424_v36 = vrot.slane %v243_v14, 2  ;;  %v421_v38 = vrot.slane %v241_v7, 2  ;;  %v246_v41 = vld [vmem:[%s1706_s16 + $0x40] sm:$0x3] }
  0x1b   : >> { %278 = vst.msk [vmem:[#allocation2 + $0x48] sm:$0xff] %vm268_vm0, %v1742_v28  ;;  %279 = vst.msk [vmem:[#allocation2 + $0x50] sm:$0xff] %vm268_vm0, %v1754_v33  ;;  %v418_v37 = vsel %vm415_vm2, %v416_v31, %v417_v26  ;;  %v1780_v42 = vld [vmem:[%s1706_s16 + $0x98] sm:$0xff]  ;;  %v1783_v43 = vld [vmem:[%s1706_s16 + $0x90] sm:$0xff]  ;;  %v321_v44 = vrot.slane %v1720_v20, 1  ;;  %v323_v45 = vrot.slane %v246_v41, 1 }
  0x1c   : >> { %280 = vst.msk [vmem:[#allocation2 + $0x58] sm:$0xff] %vm268_vm0, %v1751_v32  ;;  %356 = vrot.lane.b32.xlu1 %v319_v25, %s1600_s17  ;;  %v425_v39 = vsel %vm415_vm2, %v422_v35, %v424_v36  ;;  %v423_v40 = vsel %vm415_vm2, %v421_v38, %v422_v35  ;;  %282 = vst.msk [vmem:[#allocation2 + $0x68] sm:$0xff] %vm268_vm0, %v1780_v42  ;;  %v320_v46 = vrot.slane %v1723_v21, 1  ;;  %v427_v49 = vrot.slane %v1720_v20, 2  ;;  %v249_v54 = vld [vmem:[%s1706_s16 + $0x58] sm:$0x3] }
  0x1d   : >> { %352 = vrot.lane.b32.xlu0 %v314_v30, %s1600_s17  ;;  %281 = vst.msk [vmem:[#allocation2 + $0x60] sm:$0xff] %vm268_vm0, %v1783_v43  ;;  %v324_v47 = vsel %vm309_vm1, %v321_v44, %v323_v45  ;;  %v429_v50 = vrot.slane %v246_v41, 2  ;;  %v426_v51 = vrot.slane %v1723_v21, 2  ;;  %v1815_v55 = vld [vmem:[%s1706_s16 + $0xb0] sm:$0xff]  ;;  %v1818_v56 = vld [vmem:[%s1706_s16 + $0xa8] sm:$0xff]  ;;  %v326_v57 = vrot.slane %v1726_v22, 1 }
  0x1e   : >> { %v322_v48 = vsel %vm309_vm1, %v320_v46, %v321_v44  ;;  %v328_v58 = vrot.slane %v249_v54, 1  ;;  %284 = vst.msk [vmem:[#allocation2 + $0x78] sm:$0xff] %vm268_vm0, %v1815_v55  ;;  %283 = vst.msk [vmem:[#allocation2 + $0x70] sm:$0xff] %vm268_vm0, %v1818_v56  ;;  %v325_v59 = vrot.slane %v1731_v24, 1  ;;  %s1606_s25 = smov 28   ;;  %s1607_s26 = smov 32  }
  0x1f   : >> { %v430_v52 = vsel %vm415_vm2, %v427_v49, %v429_v50  ;;  %v428_v53 = vsel %vm415_vm2, %v426_v51, %v427_v49  ;;  %v434_v9 = vrot.slane %v249_v54, 2  ;;  %v431_v10 = vrot.slane %v1731_v24, 2  ;;  %v252_v14 = vld [vmem:[%s1706_s16 + $0x70] sm:$0x3]  ;;  %s233_s14 = sadd.s32 1, %s1598_s14  }
  0x20   : >> { %458 = vrot.lane.b32.xlu1 %v420_v34, %s1601_s20  ;;  %v329_v61 = vsel %vm309_vm1, %v326_v57, %v328_v58  ;;  %v327_v62 = vsel %vm309_vm1, %v325_v59, %v326_v57  ;;  %v331_v15 = vrot.slane %v1742_v28, 1  ;;  %v333_v16 = vrot.slane %v252_v14, 1  ;;  %v258_v59 = vld [vmem:[%s1706_s16 + $0xa0] sm:$0x3]  ;;  %p230_p4 = scmp.ge.s32.totalorder %s233_s14, 2  }
  0x21   : >> { %456 = vrot.lane.b32.xlu0 %v418_v37, %s1601_s20  ;;  %v330_v17 = vrot.slane %v1745_v29, 1  ;;  %v336_v26 = vrot.slane %v1751_v32, 1  ;;  %v335_v30 = vrot.slane %v1754_v33, 1  ;;  %v442_v37 = vrot.slane %v1751_v32, 2  ;;  %v1571_v0 = vld [vmem:[%s2276_s3 + $0x18] sm:$0xff] (%p230_p4)   ;;  %v1572_v1 = vld [vmem:[%s2276_s3 + $0x20] sm:$0xff] (%p230_p4)  }
  0x22   : >> { %v340_v63 = vrot.slane %v1783_v43, 1  ;;  %vm920_vm11 = vcmask 294144   ;;  %vm982_vm12 = vcmask 293888   ;;  %vm1609_vm13 = vmmov 0   ;;  %v1573_v2 = vld [vmem:[%s2276_s3 + $0x28] sm:$0xff] (%p230_p4)   ;;  %v1574_v3 = vld [vmem:[%s2276_s3 + $0x30] sm:$0xff] (%p230_p4)  }
  0x23   : >> { %v332_v19 = vsel %vm309_vm1, %v330_v17, %v331_v15  ;;  %v1898_v31 = vsel %vm309_vm1, %v335_v30, %v336_v26  ;;  %vm1613_vm14 = vmmov (%p230_p4), 0  }
  0x24   : >> { %462 = vrot.lane.b32.xlu1 %v425_v39, %s1601_s20 }
  0x25   : >> { %460 = vrot.lane.b32.xlu0 %v423_v40, %s1601_s20 }
  0x28   : >> { %525 = vrot.lane.b32.xlu1 %v242_v8, %s1602_s21  ;;  %v432_v8 = vrot.slane %v1726_v22, 2 }
  0x29   : >> { %523 = vrot.lane.b32.xlu0 %v241_v7, %s1602_s21  ;;  %v1371_v7 = vcombine.low %v1675_v4, %v1675_v4 }
  0x2a   : >> { %v435_v12 = vsel %vm415_vm2, %v432_v8, %v434_v9  ;;  %v433_v13 = vsel %vm415_vm2, %v431_v10, %v432_v8 }
  0x2b   : >> { %1528 = vmatprep.subr.msk.bf16.mxu0 %vm1007_vm3, %v1371_v7  ;;  %v1009_v11 = vsel %vm1007_vm3, %v1371_v7, 0 }
  0x2c   : >> { %529 = vrot.lane.b32.xlu1 %v1720_v20, %s1602_s21  ;;  %1432 = vmatpush3.bf16.msra.mxu0 %v1009_v11  ;;  %v447_v11 = vrot.slane %v1780_v42, 2 }
  0x2d   : >> { %527 = vrot.lane.b32.xlu0 %v1723_v21, %s1602_s21 }
  0x30   : >> { %596 = vrot.lane.b32.xlu1 %v319_v25, %s1603_s22  ;;  %v255_v25 = vld [vmem:[%s1706_s16 + $0x88] sm:$0x3] }
  0x31   : >> { %594 = vrot.lane.b32.xlu0 %v317_v18, %s1603_s22  ;;  %v334_v18 = vsel %vm309_vm1, %v331_v15, %v333_v16  ;;  %v338_v27 = vrot.slane %v255_v25, 1  ;;  %v444_v38 = vrot.slane %v255_v25, 2  ;;  %v346_v25 = vrot.slane %v1815_v55, 1 }
  0x33   : >> { %v1917_v44 = vsel %vm415_vm2, %v442_v37, %v444_v38 }
  0x34   : >> { %600 = vrot.lane.b32.xlu1 %v324_v47, %s1603_s22 }
  0x35   : >> { %598 = vrot.lane.b32.xlu0 %v322_v48, %s1603_s22 }
  0x38   : >> { %666 = vrot.lane.b32.xlu1 %v425_v39, %s1604_s23 }
  0x39   : >> { %664 = vrot.lane.b32.xlu0 %v423_v40, %s1604_s23  ;;  %v441_v40 = vrot.slane %v1754_v33, 2 }
  0x3b   : >> { %v1920_v46 = vsel %vm415_vm2, %v441_v40, %v442_v37 }
  0x3c   : >> { %670 = vrot.lane.b32.xlu1 %v430_v52, %s1604_s23 }
  0x3d   : >> { %668 = vrot.lane.b32.xlu0 %v428_v53, %s1604_s23 }
  0x40   : >> { %733 = vrot.lane.b32.xlu1 %v1720_v20, %s1605_s24  ;;  %v437_v20 = vrot.slane %v1742_v28, 2 }
  0x41   : >> { %731 = vrot.lane.b32.xlu0 %v1723_v21, %s1605_s24  ;;  %v439_v21 = vrot.slane %v252_v14, 2  ;;  %v446_v14 = vrot.slane %v1783_v43, 2 }
  0x43   : >> { %v440_v23 = vsel %vm415_vm2, %v437_v20, %v439_v21 }
  0x44   : >> { %737 = vrot.lane.b32.xlu1 %v1726_v22, %s1605_s24 }
  0x45   : >> { %735 = vrot.lane.b32.xlu0 %v1731_v24, %s1605_s24 }
  0x48   : >> { %804 = vrot.lane.b32.xlu1 %v324_v47, %s1606_s25 }
  0x49   : >> { %802 = vrot.lane.b32.xlu0 %v322_v48, %s1606_s25 }
  0x4c   : >> { %808 = vrot.lane.b32.xlu1 %v329_v61, %s1606_s25 }
  0x4d   : >> { %806 = vrot.lane.b32.xlu0 %v327_v62, %s1606_s25 }
  0x50   : >> { %874 = vrot.lane.b32.xlu1 %v430_v52, %s1607_s26 }
  0x51   : >> { %872 = vrot.lane.b32.xlu0 %v428_v53, %s1607_s26 }
  0x54   : >> { %360 = vrot.lane.b32.xlu1 %v324_v47, %s1600_s17 }
  0x55   : >> { %358 = vrot.lane.b32.xlu0 %v322_v48, %s1600_s17 }
  0x58   : >> { %878 = vrot.lane.b32.xlu1 %v435_v12, %s1607_s26 }
  0x59   : >> { %876 = vrot.lane.b32.xlu0 %v433_v13, %s1607_s26 }
  0x5c   : >> { %364 = vrot.lane.b32.xlu1 %v329_v61, %s1600_s17 }
  0x5d   : >> { %362 = vrot.lane.b32.xlu0 %v327_v62, %s1600_s17 }
  0x60   : >> { %466 = vrot.lane.b32.xlu1 %v430_v52, %s1601_s20 }
  0x61   : >> { %464 = vrot.lane.b32.xlu0 %v428_v53, %s1601_s20 }
  0x64   : >> { %470 = vrot.lane.b32.xlu1 %v435_v12, %s1601_s20 }
  0x65   : >> { %468 = vrot.lane.b32.xlu0 %v433_v13, %s1601_s20 }
  0x68   : >> { %533 = vrot.lane.b32.xlu1 %v1726_v22, %s1602_s21  ;;  %v436_v22 = vrot.slane %v1745_v29, 2 }
  0x69   : >> { %531 = vrot.lane.b32.xlu0 %v1731_v24, %s1602_s21 }
  0x6a   : >> { %v438_v24 = vsel %vm415_vm2, %v436_v22, %v437_v20 }
  0x6c   : >> { %537 = vrot.lane.b32.xlu1 %v1742_v28, %s1602_s21 }
  0x6d   : >> { %535 = vrot.lane.b32.xlu0 %v1745_v29, %s1602_s21 }
  0x70   : >> { %604 = vrot.lane.b32.xlu1 %v329_v61, %s1603_s22  ;;  %v341_v61 = vrot.slane %v1780_v42, 1 }
  0x71   : >> { %602 = vrot.lane.b32.xlu0 %v327_v62, %s1603_s22 }
  0x72   : >> { %v1969_v9 = vsel %vm309_vm1, %v340_v63, %v341_v61 }
  0x74   : >> { %608 = vrot.lane.b32.xlu1 %v334_v18, %s1603_s22 }
  0x75   : >> { %606 = vrot.lane.b32.xlu0 %v332_v19, %s1603_s22 }
  0x78   : >> { %674 = vrot.lane.b32.xlu1 %v435_v12, %s1604_s23  ;;  %v449_v12 = vrot.slane %v258_v59, 2 }
  0x79   : >> { %672 = vrot.lane.b32.xlu0 %v433_v13, %s1604_s23 }
  0x7a   : >> { %v1986_v16 = vsel %vm415_vm2, %v447_v11, %v449_v12 }
  0x7c   : >> { %678 = vrot.lane.b32.xlu1 %v440_v23, %s1604_s23 }
  0x7d   : >> { %676 = vrot.lane.b32.xlu0 %v438_v24, %s1604_s23 }
  0x80   : >> { %741 = vrot.lane.b32.xlu1 %v1742_v28, %s1605_s24  ;;  %v1895_v28 = vsel %vm309_vm1, %v336_v26, %v338_v27  ;;  %v345_v27 = vrot.slane %v1818_v56, 1 }
  0x81   : >> { %739 = vrot.lane.b32.xlu0 %v1745_v29, %s1605_s24 }
  0x84   : >> { %745 = vrot.lane.b32.xlu1 %v1751_v32, %s1605_s24 }
  0x85   : >> { %743 = vrot.lane.b32.xlu0 %v1754_v33, %s1605_s24 }
  0x88   : >> { %812 = vrot.lane.b32.xlu1 %v334_v18, %s1606_s25 }
  0x89   : >> { %810 = vrot.lane.b32.xlu0 %v332_v19, %s1606_s25 }
  0x8a   : >> { %v355_v29 = vpop.permute.xlu1 %354 }
  0x8b   : >> { %401 = vst.msk [vmem:[#allocation2 + $0x10] sm:$0xff] %vm398_vm4, %v355_v29  ;;  %v351_v34 = vpop.permute.xlu0 %350  ;;  %v2022_v29 = vsel %vm309_vm1, %v345_v27, %v346_v25 }
  0x8c   : >> { %399 = vst.msk [vmem:[#allocation2] sm:$0xff] %vm398_vm4, %v351_v34  ;;  %816 = vrot.lane.b32.xlu1 %v1895_v28, %s1606_s25 }
  0x8d   : >> { %814 = vrot.lane.b32.xlu0 %v1898_v31, %s1606_s25 }
  0x8e   : >> { %v357_v35 = vpop.permute.xlu1 %356 }
  0x8f   : >> { %402 = vst.msk [vmem:[#allocation2 + $0x18] sm:$0xff] %vm398_vm4, %v357_v35  ;;  %v353_v36 = vpop.permute.xlu0 %352 }
  0x90   : >> { %400 = vst.msk [vmem:[#allocation2 + $0x8] sm:$0xff] %vm398_vm4, %v353_v36  ;;  %882 = vrot.lane.b32.xlu1 %v440_v23, %s1607_s26 }
  0x91   : >> { %880 = vrot.lane.b32.xlu0 %v438_v24, %s1607_s26 }
  0x92   : >> { %v459_v39 = vpop.permute.xlu1 %458 }
  0x93   : >> { %506 = vst.msk [vmem:[#allocation2 + $0x8] sm:$0xff] %vm504_vm5, %v459_v39  ;;  %v457_v41 = vpop.permute.xlu0 %456  ;;  %v452_v39 = vrot.slane %v1815_v55, 2 }
  0x94   : >> { %505 = vst.msk [vmem:[#allocation2] sm:$0xff] %vm504_vm5, %v457_v41  ;;  %368 = vrot.lane.b32.xlu1 %v334_v18, %s1600_s17  ;;  %v1989_v18 = vsel %vm415_vm2, %v446_v14, %v447_v11 }
  0x95   : >> { %366 = vrot.lane.b32.xlu0 %v332_v19, %s1600_s17 }
  0x96   : >> { %v463_v45 = vpop.permute.xlu1 %462 }
  0x97   : >> { %508 = vst.msk [vmem:[#allocation2 + $0x18] sm:$0xff] %vm504_vm5, %v463_v45  ;;  %v461_v47 = vpop.permute.xlu0 %460  ;;  %v451_v45 = vrot.slane %v1818_v56, 2 }
  0x98   : >> { %507 = vst.msk [vmem:[#allocation2 + $0x10] sm:$0xff] %vm504_vm5, %v461_v47  ;;  %886 = vrot.lane.b32.xlu1 %v1917_v44, %s1607_s26 }
  0x99   : >> { %884 = vrot.lane.b32.xlu0 %v1920_v46, %s1607_s26 }
  0x9a   : >> { %v526_v48 = vpop.permute.xlu1 %525 }
  0x9b   : >> { %573 = vst.msk [vmem:[#allocation2 + $0x8] sm:$0xff] %vm571_vm6, %v526_v48  ;;  %v524_v49 = vpop.permute.xlu0 %523 }
  0x9c   : >> { %572 = vst.msk [vmem:[#allocation2] sm:$0xff] %vm571_vm6, %v524_v49  ;;  %372 = vrot.lane.b32.xlu1 %v1895_v28, %s1600_s17 }
  0x9d   : >> { %370 = vrot.lane.b32.xlu0 %v1898_v31, %s1600_s17 }
  0x9e   : >> { %v530_v50 = vpop.permute.xlu1 %529 }
  0x9f   : >> { %575 = vst.msk [vmem:[#allocation2 + $0x18] sm:$0xff] %vm571_vm6, %v530_v50  ;;  %v528_v51 = vpop.permute.xlu0 %527 }
  0xa0   : >> { %574 = vst.msk [vmem:[#allocation2 + $0x10] sm:$0xff] %vm571_vm6, %v528_v51  ;;  %474 = vrot.lane.b32.xlu1 %v440_v23, %s1601_s20  ;;  %v261_v23 = vld [vmem:[%s1706_s16 + $0xb8] sm:$0x3]  ;;  %v2050_v51 = vsel %vm415_vm2, %v451_v45, %v452_v39 }
  0xa1   : >> { %472 = vrot.lane.b32.xlu0 %v438_v24, %s1601_s20  ;;  %v454_v40 = vrot.slane %v261_v23, 2 }
  0xa2   : >> { %v597_v52 = vpop.permute.xlu1 %596 }
  0xa3   : >> { %644 = vst.msk [vmem:[#allocation2 + $0x8] sm:$0xff] %vm642_vm7, %v597_v52  ;;  %v595_v53 = vpop.permute.xlu0 %594  ;;  %v2046_v49 = vsel %vm415_vm2, %v452_v39, %v454_v40 }
  0xa4   : >> { %643 = vst.msk [vmem:[#allocation2] sm:$0xff] %vm642_vm7, %v595_v53  ;;  %478 = vrot.lane.b32.xlu1 %v1917_v44, %s1601_s20 }
  0xa5   : >> { %476 = vrot.lane.b32.xlu0 %v1920_v46, %s1601_s20 }
  0xa6   : >> { %v601_v54 = vpop.permute.xlu1 %600 }
  0xa7   : >> { %646 = vst.msk [vmem:[#allocation2 + $0x18] sm:$0xff] %vm642_vm7, %v601_v54  ;;  %v599_v57 = vpop.permute.xlu0 %598 }
  0xa8   : >> { %645 = vst.msk [vmem:[#allocation2 + $0x10] sm:$0xff] %vm642_vm7, %v599_v57  ;;  %541 = vrot.lane.b32.xlu1 %v1751_v32, %s1602_s21  ;;  %v343_v32 = vrot.slane %v258_v59, 1 }
  0xa9   : >> { %539 = vrot.lane.b32.xlu0 %v1754_v33, %s1602_s21 }
  0xaa   : >> { %v667_v58 = vpop.permute.xlu1 %666  ;;  %v1966_v7 = vsel %vm309_vm1, %v341_v61, %v343_v32 }
  0xab   : >> { %714 = vst.msk [vmem:[#allocation2 + $0x8] sm:$0xff] %vm712_vm8, %v667_v58  ;;  %v665_v60 = vpop.permute.xlu0 %664 }
  0xac   : >> { %713 = vst.msk [vmem:[#allocation2] sm:$0xff] %vm712_vm8, %v665_v60  ;;  %545 = vrot.lane.b32.xlu1 %v1780_v42, %s1602_s21 }
  0xad   : >> { %543 = vrot.lane.b32.xlu0 %v1783_v43, %s1602_s21 }
  0xae   : >> { %v671_v62 = vpop.permute.xlu1 %670 }
  0xaf   : >> { %716 = vst.msk [vmem:[#allocation2 + $0x18] sm:$0xff] %vm712_vm8, %v671_v62  ;;  %v669_v33 = vpop.permute.xlu0 %668  ;;  %v263_v62 = vld [vmem:[%s1706_s16 + $0xc8] sm:$0xff] }
  0xb0   : >> { %715 = vst.msk [vmem:[#allocation2 + $0x10] sm:$0xff] %vm712_vm8, %v669_v33  ;;  %612 = vrot.lane.b32.xlu1 %v1895_v28, %s1603_s22  ;;  %v262_v33 = vld [vmem:[%s1706_s16 + $0xc0] sm:$0xff] }
  0xb1   : >> { %610 = vrot.lane.b32.xlu0 %v1898_v31, %s1603_s22  ;;  %v589_v11 = vrot.slane %v262_v33, 1 }
  0xb2   : >> { %v734_v8 = vpop.permute.xlu1 %733 }
  0xb3   : >> { %781 = vst.msk [vmem:[#allocation2 + $0x8] sm:$0xff] %vm779_vm9, %v734_v8  ;;  %v732_v10 = vpop.permute.xlu0 %731 }
  0xb4   : >> { %780 = vst.msk [vmem:[#allocation2] sm:$0xff] %vm779_vm9, %v732_v10  ;;  %616 = vrot.lane.b32.xlu1 %v1966_v7, %s1603_s22 }
  0xb5   : >> { %614 = vrot.lane.b32.xlu0 %v1969_v9, %s1603_s22 }
  0xb6   : >> { %v738_v13 = vpop.permute.xlu1 %737 }
  0xb7   : >> { %783 = vst.msk [vmem:[#allocation2 + $0x18] sm:$0xff] %vm779_vm9, %v738_v13  ;;  %v736_v15 = vpop.permute.xlu0 %735 }
  0xb8   : >> { %782 = vst.msk [vmem:[#allocation2 + $0x10] sm:$0xff] %vm779_vm9, %v736_v15  ;;  %682 = vrot.lane.b32.xlu1 %v1917_v44, %s1604_s23 }
  0xb9   : >> { %680 = vrot.lane.b32.xlu0 %v1920_v46, %s1604_s23 }
  0xba   : >> { %v805_v17 = vpop.permute.xlu1 %804 }
  0xbb   : >> { %852 = vst.msk [vmem:[#allocation2 + $0x8] sm:$0xff] %vm850_vm10, %v805_v17  ;;  %v803_v19 = vpop.permute.xlu0 %802 }
  0xbc   : >> { %851 = vst.msk [vmem:[#allocation2] sm:$0xff] %vm850_vm10, %v803_v19  ;;  %686 = vrot.lane.b32.xlu1 %v1986_v16, %s1604_s23 }
  0xbd   : >> { %684 = vrot.lane.b32.xlu0 %v1989_v18, %s1604_s23 }
  0xbe   : >> { %v809_v20 = vpop.permute.xlu1 %808 }
  0xbf   : >> { %854 = vst.msk [vmem:[#allocation2 + $0x18] sm:$0xff] %vm850_vm10, %v809_v20  ;;  %v807_v21 = vpop.permute.xlu0 %806 }
  0xc0   : >> { %853 = vst.msk [vmem:[#allocation2 + $0x10] sm:$0xff] %vm850_vm10, %v807_v21  ;;  %749 = vrot.lane.b32.xlu1 %v1780_v42, %s1605_s24  ;;  %v348_v42 = vrot.slane %v261_v23, 1 }
  0xc1   : >> { %747 = vrot.lane.b32.xlu0 %v1783_v43, %s1605_s24 }
  0xc2   : >> { %v875_v22 = vpop.permute.xlu1 %874  ;;  %v2019_v30 = vsel %vm309_vm1, %v346_v25, %v348_v42 }
  0xc3   : >> { %922 = vst.msk [vmem:[#allocation2 + $0x8] sm:$0xff] %vm920_vm11, %v875_v22  ;;  %v873_v24 = vpop.permute.xlu0 %872 }
  0xc4   : >> { %921 = vst.msk [vmem:[#allocation2] sm:$0xff] %vm920_vm11, %v873_v24  ;;  %753 = vrot.lane.b32.xlu1 %v1815_v55, %s1605_s24 }
  0xc5   : >> { %751 = vrot.lane.b32.xlu0 %v1818_v56, %s1605_s24 }
  0xc6   : >> { %v361_v26 = vpop.permute.xlu1 %360 }
  0xc7   : >> { %404 = vst.msk [vmem:[#allocation2 + $0x28] sm:$0xff] %vm398_vm4, %v361_v26  ;;  %v359_v43 = vpop.permute.xlu0 %358  ;;  %v266_v26 = vld [vmem:[%s1706_s16 + $0xe0] sm:$0xff] }
  0xc8   : >> { %403 = vst.msk [vmem:[#allocation2 + $0x20] sm:$0xff] %vm398_vm4, %v359_v43  ;;  %820 = vrot.lane.b32.xlu1 %v1966_v7, %s1606_s25  ;;  %v265_v43 = vld [vmem:[%s1706_s16 + $0xd8] sm:$0xff] }
  0xc9   : >> { %818 = vrot.lane.b32.xlu0 %v1969_v9, %s1606_s25 }
  0xca   : >> { %v879_v28 = vpop.permute.xlu1 %878  ;;  %v938_v31 = vld [vmem:[#allocation2 + $0x8] sm:$0xff] }
  0xcb   : >> { %924 = vst.msk [vmem:[#allocation2 + $0x18] sm:$0xff] %vm920_vm11, %v879_v28  ;;  %v877_v34 = vpop.permute.xlu0 %876  ;;  %v937_v35 = vld [vmem:[#allocation2] sm:$0xff] }
  0xcc   : >> { %923 = vst.msk [vmem:[#allocation2 + $0x10] sm:$0xff] %vm920_vm11, %v877_v34  ;;  %824 = vrot.lane.b32.xlu1 %v2019_v30, %s1606_s25  ;;  %v953_v36 = vpack.c.bf16 %v938_v31, %v937_v35  ;;  %v797_v34 = vrot.slane %v265_v43, 1 }
  0xcd   : >> { %822 = vrot.lane.b32.xlu0 %v2022_v29, %s1606_s25 }
  0xce   : >> { %1433 = vmatprep.mubr.msk.bf16.mxu0 %vm982_vm12, %v953_v36  ;;  %v365_v37 = vpop.permute.xlu1 %364 }
  0xcf   : >> { %406 = vst.msk [vmem:[#allocation2 + $0x38] sm:$0xff] %vm398_vm4, %v365_v37  ;;  %v363_v38 = vpop.permute.xlu0 %362 }
  0xd0   : >> { %405 = vst.msk [vmem:[#allocation2 + $0x30] sm:$0xff] %vm398_vm4, %v363_v38  ;;  %890 = vrot.lane.b32.xlu1 %v1986_v16, %s1607_s26 }
  0xd1   : >> { %888 = vrot.lane.b32.xlu0 %v1989_v18, %s1607_s26 }
  0xd2   : >> { %v467_v41 = vpop.permute.xlu1 %466  ;;  %v940_v44 = vld [vmem:[#allocation2 + $0x18] sm:$0xff] }
  0xd3   : >> { %510 = vst.msk [vmem:[#allocation2 + $0x28] sm:$0xff] %vm504_vm5, %v467_v41  ;;  %v465_v46 = vpop.permute.xlu0 %464  ;;  %v939_v47 = vld [vmem:[#allocation2 + $0x10] sm:$0xff] }
  0xd4   : >> { %509 = vst.msk [vmem:[#allocation2 + $0x20] sm:$0xff] %vm504_vm5, %v465_v46  ;;  %376 = vrot.lane.b32.xlu1 %v1966_v7, %s1600_s17  ;;  %v954_v48 = vpack.c.bf16 %v940_v44, %v939_v47  ;;  %v264_v7 = vld [vmem:[%s1706_s16 + $0xd0] sm:$0x3]  ;;  %v868_v46 = vrot.slane %v266_v26, 2 }
  0xd5   : >> { %374 = vrot.lane.b32.xlu0 %v1969_v9, %s1600_s17  ;;  %v590_v9 = vrot.slane %v263_v62, 1  ;;  %v592_v10 = vrot.slane %v264_v7, 1  ;;  %v662_v17 = vrot.slane %v264_v7, 2 }
  0xd6   : >> { %1434 = vmatmul.mubr.msk.bf16.vlgmr.msra.gmra.mrb[0].mxu0 %vm982_vm12, %v954_v48  ;;  %v471_v50 = vpop.permute.xlu1 %470  ;;  %v867_v48 = vrot.slane %v265_v43, 2 }
  0xd7   : >> { %512 = vst.msk [vmem:[#allocation2 + $0x38] sm:$0xff] %vm504_vm5, %v471_v50  ;;  %v469_v52 = vpop.permute.xlu0 %468  ;;  %v593_v12 = vsel %vm309_vm1, %v590_v9, %v592_v10  ;;  %v591_v14 = vsel %vm309_vm1, %v589_v11, %v590_v9 }
  0xd8   : >> { %511 = vst.msk [vmem:[#allocation2 + $0x30] sm:$0xff] %vm504_vm5, %v469_v52  ;;  %894 = vrot.lane.b32.xlu1 %v2046_v49, %s1607_s26 }
  0xd9   : >> { %892 = vrot.lane.b32.xlu0 %v2050_v51, %s1607_s26 }
  0xda   : >> { %v534_v53 = vpop.permute.xlu1 %533 }
  0xdb   : >> { %577 = vst.msk [vmem:[#allocation2 + $0x28] sm:$0xff] %vm571_vm6, %v534_v53  ;;  %v532_v54 = vpop.permute.xlu0 %531  ;;  %v869_v53 = vsel %vm415_vm2, %v867_v48, %v868_v46 }
  0xdc   : >> { %576 = vst.msk [vmem:[#allocation2 + $0x20] sm:$0xff] %vm571_vm6, %v532_v54  ;;  %380 = vrot.lane.b32.xlu1 %v2019_v30, %s1600_s17 }
  0xdd   : >> { %378 = vrot.lane.b32.xlu0 %v2022_v29, %s1600_s17 }
  0xde   : >> { %v538_v57 = vpop.permute.xlu1 %537 }
  0xdf   : >> { %579 = vst.msk [vmem:[#allocation2 + $0x38] sm:$0xff] %vm571_vm6, %v538_v57  ;;  %v536_v58 = vpop.permute.xlu0 %535 }
  0xe0   : >> { %578 = vst.msk [vmem:[#allocation2 + $0x30] sm:$0xff] %vm571_vm6, %v536_v58  ;;  %482 = vrot.lane.b32.xlu1 %v1986_v16, %s1601_s20  ;;  %v660_v16 = vrot.slane %v263_v62, 2 }
  0xe1   : >> { %480 = vrot.lane.b32.xlu0 %v1989_v18, %s1601_s20  ;;  %v659_v18 = vrot.slane %v262_v33, 2 }
  0xe2   : >> { %v605_v59 = vpop.permute.xlu1 %604  ;;  %v663_v21 = vsel %vm415_vm2, %v660_v16, %v662_v17 }
  0xe3   : >> { %648 = vst.msk [vmem:[#allocation2 + $0x28] sm:$0xff] %vm642_vm7, %v605_v59  ;;  %v603_v60 = vpop.permute.xlu0 %602  ;;  %v661_v23 = vsel %vm415_vm2, %v659_v18, %v660_v16 }
  0xe4   : >> { %647 = vst.msk [vmem:[#allocation2 + $0x20] sm:$0xff] %vm642_vm7, %v603_v60  ;;  %486 = vrot.lane.b32.xlu1 %v2046_v49, %s1601_s20 }
  0xe5   : >> { %484 = vrot.lane.b32.xlu0 %v2050_v51, %s1601_s20 }
  0xe6   : >> { %v609_v61 = vpop.permute.xlu1 %608 }
  0xe7   : >> { %650 = vst.msk [vmem:[#allocation2 + $0x38] sm:$0xff] %vm642_vm7, %v609_v61  ;;  %v607_v32 = vpop.permute.xlu0 %606 }
  0xe8   : >> { %649 = vst.msk [vmem:[#allocation2 + $0x30] sm:$0xff] %vm642_vm7, %v607_v32  ;;  %549 = vrot.lane.b32.xlu1 %v1815_v55, %s1602_s21 }
  0xe9   : >> { %547 = vrot.lane.b32.xlu0 %v1818_v56, %s1602_s21 }
  0xea   : >> { %v675_v63 = vpop.permute.xlu1 %674 }
  0xeb   : >> { %718 = vst.msk [vmem:[#allocation2 + $0x28] sm:$0xff] %vm712_vm8, %v675_v63  ;;  %v673_v8 = vpop.permute.xlu0 %672 }
  0xec   : >> { %717 = vst.msk [vmem:[#allocation2 + $0x20] sm:$0xff] %vm712_vm8, %v673_v8  ;;  %553 = vrot.lane.b32.xlu1 %v263_v62, %s1602_s21 }
  0xed   : >> { %551 = vrot.lane.b32.xlu0 %v262_v33, %s1602_s21 }
  0xee   : >> { %v679_v55 = vpop.permute.xlu1 %678 }
  0xef   : >> { %720 = vst.msk [vmem:[#allocation2 + $0x38] sm:$0xff] %vm712_vm8, %v679_v55  ;;  %v677_v56 = vpop.permute.xlu0 %676 }
  0xf0   : >> { %719 = vst.msk [vmem:[#allocation2 + $0x30] sm:$0xff] %vm712_vm8, %v677_v56  ;;  %620 = vrot.lane.b32.xlu1 %v2019_v30, %s1603_s22  ;;  %v267_v30 = vld [vmem:[%s1706_s16 + $0xe8] sm:$0x3] }
  0xf1   : >> { %618 = vrot.lane.b32.xlu0 %v2022_v29, %s1603_s22  ;;  %v798_v29 = vrot.slane %v266_v26, 1  ;;  %v800_v31 = vrot.slane %v267_v30, 1  ;;  %v870_v47 = vrot.slane %v267_v30, 2 }
  0xf2   : >> { %v742_v13 = vpop.permute.xlu1 %741 }
  0xf3   : >> { %785 = vst.msk [vmem:[#allocation2 + $0x28] sm:$0xff] %vm779_vm9, %v742_v13  ;;  %v740_v15 = vpop.permute.xlu0 %739  ;;  %v801_v37 = vsel %vm309_vm1, %v798_v29, %v800_v31  ;;  %v799_v39 = vsel %vm309_vm1, %v797_v34, %v798_v29  ;;  %v1608_v13 = vmov 0.0|0.0  }
  0xf4   : >> { %784 = vst.msk [vmem:[#allocation2 + $0x20] sm:$0xff] %vm779_vm9, %v740_v15  ;;  %624 = vrot.lane.b32.xlu1 %v593_v12, %s1603_s22  ;;  %1504 = vmatprep.subr.bf16.mxu1 %v1608_v13 }
  0xf5   : >> { %622 = vrot.lane.b32.xlu0 %v591_v14, %s1603_s22 }
  0xf6   : >> { %v746_v19 = vpop.permute.xlu1 %745 }
  0xf7   : >> { %787 = vst.msk [vmem:[#allocation2 + $0x38] sm:$0xff] %vm779_vm9, %v746_v19  ;;  %v744_v20 = vpop.permute.xlu0 %743 }
  0xf8   : >> { %786 = vst.msk [vmem:[#allocation2 + $0x30] sm:$0xff] %vm779_vm9, %v744_v20  ;;  %690 = vrot.lane.b32.xlu1 %v2046_v49, %s1604_s23 }
  0xf9   : >> { %688 = vrot.lane.b32.xlu0 %v2050_v51, %s1604_s23  ;;  %v871_v51 = vsel %vm415_vm2, %v868_v46, %v870_v47 }
  0xfa   : >> { %v813_v22 = vpop.permute.xlu1 %812 }
  0xfb   : >> { %856 = vst.msk [vmem:[#allocation2 + $0x28] sm:$0xff] %vm850_vm10, %v813_v22  ;;  %v811_v24 = vpop.permute.xlu0 %810 }
  0xfc   : >> { %855 = vst.msk [vmem:[#allocation2 + $0x20] sm:$0xff] %vm850_vm10, %v811_v24  ;;  %694 = vrot.lane.b32.xlu1 %v663_v21, %s1604_s23 }
  0xfd   : >> { %692 = vrot.lane.b32.xlu0 %v661_v23, %s1604_s23 }
  0xfe   : >> { %v817_v25 = vpop.permute.xlu1 %816 }
  0xff   : >> { %858 = vst.msk [vmem:[#allocation2 + $0x38] sm:$0xff] %vm850_vm10, %v817_v25  ;;  %v815_v42 = vpop.permute.xlu0 %814 }
 0x100   : >> { %857 = vst.msk [vmem:[#allocation2 + $0x30] sm:$0xff] %vm850_vm10, %v815_v42  ;;  %757 = vrot.lane.b32.xlu1 %v263_v62, %s1605_s24 }
 0x101   : >> { %755 = vrot.lane.b32.xlu0 %v262_v33, %s1605_s24 }
 0x102   : >> { %v883_v27 = vpop.permute.xlu1 %882 }
 0x103   : >> { %926 = vst.msk [vmem:[#allocation2 + $0x28] sm:$0xff] %vm920_vm11, %v883_v27  ;;  %v881_v28 = vpop.permute.xlu0 %880 }
 0x104   : >> { %925 = vst.msk [vmem:[#allocation2 + $0x20] sm:$0xff] %vm920_vm11, %v881_v28  ;;  %761 = vrot.lane.b32.xlu1 %v266_v26, %s1605_s24 }
 0x105   : >> { %759 = vrot.lane.b32.xlu0 %v265_v43, %s1605_s24 }
 0x106   : >> { %v369_v35 = vpop.permute.xlu1 %368 }
 0x107   : >> { %408 = vst.msk [vmem:[#allocation2 + $0x48] sm:$0xff] %vm398_vm4, %v369_v35  ;;  %v367_v36 = vpop.permute.xlu0 %366 }
 0x108   : >> { %407 = vst.msk [vmem:[#allocation2 + $0x40] sm:$0xff] %vm398_vm4, %v367_v36  ;;  %828 = vrot.lane.b32.xlu1 %v593_v12, %s1606_s25 }
 0x109   : >> { %826 = vrot.lane.b32.xlu0 %v591_v14, %s1606_s25 }
 0x10a   : >> { %v887_v38 = vpop.permute.xlu1 %886  ;;  %v942_v40 = vld [vmem:[#allocation2 + $0x28] sm:$0xff] }
 0x10b   : >> { %928 = vst.msk [vmem:[#allocation2 + $0x38] sm:$0xff] %vm920_vm11, %v887_v38  ;;  %v885_v41 = vpop.permute.xlu0 %884  ;;  %v941_v44 = vld [vmem:[#allocation2 + $0x20] sm:$0xff] }
 0x10c   : >> { %927 = vst.msk [vmem:[#allocation2 + $0x30] sm:$0xff] %vm920_vm11, %v885_v41  ;;  %832 = vrot.lane.b32.xlu1 %v801_v37, %s1606_s25  ;;  %v955_v45 = vpack.c.bf16 %v942_v40, %v941_v44 }
 0x10d   : >> { %830 = vrot.lane.b32.xlu0 %v799_v39, %s1606_s25 }
 0x10e   : >> { %1437 = vmatprep.mubr.msk.bf16.mxu0 %vm982_vm12, %v955_v45  ;;  %v373_v49 = vpop.permute.xlu1 %372 }
 0x10f   : >> { %410 = vst.msk [vmem:[#allocation2 + $0x58] sm:$0xff] %vm398_vm4, %v373_v49  ;;  %v371_v50 = vpop.permute.xlu0 %370 }
 0x110   : >> { %409 = vst.msk [vmem:[#allocation2 + $0x50] sm:$0xff] %vm398_vm4, %v371_v50  ;;  %898 = vrot.lane.b32.xlu1 %v663_v21, %s1607_s26 }
 0x111   : >> { %896 = vrot.lane.b32.xlu0 %v661_v23, %s1607_s26 }
 0x112   : >> { %v475_v52 = vpop.permute.xlu1 %474  ;;  %v944_v54 = vld [vmem:[#allocation2 + $0x38] sm:$0xff] }
 0x113   : >> { %514 = vst.msk [vmem:[#allocation2 + $0x48] sm:$0xff] %vm504_vm5, %v475_v52  ;;  %v473_v57 = vpop.permute.xlu0 %472  ;;  %v943_v58 = vld [vmem:[#allocation2 + $0x30] sm:$0xff] }
 0x114   : >> { %513 = vst.msk [vmem:[#allocation2 + $0x40] sm:$0xff] %vm504_vm5, %v473_v57  ;;  %902 = vrot.lane.b32.xlu1 %v871_v51, %s1607_s26  ;;  %v956_v59 = vpack.c.bf16 %v944_v54, %v943_v58 }
 0x115   : >> { %900 = vrot.lane.b32.xlu0 %v869_v53, %s1607_s26 }
 0x116   : >> { %1438 = vmatmul.mubr.msk.bf16.gmra.mrb[4].mxu0 %vm982_vm12, %v956_v59  ;;  %v479_v60 = vpop.permute.xlu1 %478 }
 0x117   : >> { %516 = vst.msk [vmem:[#allocation2 + $0x58] sm:$0xff] %vm504_vm5, %v479_v60  ;;  %v477_v61 = vpop.permute.xlu0 %476 }
 0x118   : >> { %515 = vst.msk [vmem:[#allocation2 + $0x50] sm:$0xff] %vm504_vm5, %v477_v61 }
 0x11a   : >> { %v542_v32 = vpop.permute.xlu1 %541 }
 0x11b   : >> { %581 = vst.msk [vmem:[#allocation2 + $0x48] sm:$0xff] %vm571_vm6, %v542_v32  ;;  %v540_v62 = vpop.permute.xlu0 %539 }
 0x11c   : >> { %580 = vst.msk [vmem:[#allocation2 + $0x40] sm:$0xff] %vm571_vm6, %v540_v62 }
 0x11e   : >> { %v546_v63 = vpop.permute.xlu1 %545 }
 0x11f   : >> { %583 = vst.msk [vmem:[#allocation2 + $0x58] sm:$0xff] %vm571_vm6, %v546_v63  ;;  %v544_v33 = vpop.permute.xlu0 %543 }
 0x120   : >> { %582 = vst.msk [vmem:[#allocation2 + $0x50] sm:$0xff] %vm571_vm6, %v544_v33 }
 0x122   : >> { %v613_v7 = vpop.permute.xlu1 %612 }
 0x123   : >> { %652 = vst.msk [vmem:[#allocation2 + $0x48] sm:$0xff] %vm642_vm7, %v613_v7  ;;  %v611_v8 = vpop.permute.xlu0 %610 }
 0x124   : >> { %651 = vst.msk [vmem:[#allocation2 + $0x40] sm:$0xff] %vm642_vm7, %v611_v8 }
 0x126   : >> { %v617_v9 = vpop.permute.xlu1 %616 }
 0x127   : >> { %654 = vst.msk [vmem:[#allocation2 + $0x58] sm:$0xff] %vm642_vm7, %v617_v9  ;;  %v615_v10 = vpop.permute.xlu0 %614 }
 0x128   : >> { %653 = vst.msk [vmem:[#allocation2 + $0x50] sm:$0xff] %vm642_vm7, %v615_v10 }
 0x12a   : >> { %v683_v11 = vpop.permute.xlu1 %682 }
 0x12b   : >> { %722 = vst.msk [vmem:[#allocation2 + $0x48] sm:$0xff] %vm712_vm8, %v683_v11  ;;  %v681_v55 = vpop.permute.xlu0 %680 }
 0x12c   : >> { %721 = vst.msk [vmem:[#allocation2 + $0x40] sm:$0xff] %vm712_vm8, %v681_v55 }
 0x12e   : >> { %v687_v56 = vpop.permute.xlu1 %686 }
 0x12f   : >> { %724 = vst.msk [vmem:[#allocation2 + $0x58] sm:$0xff] %vm712_vm8, %v687_v56  ;;  %v685_v12 = vpop.permute.xlu0 %684 }
 0x130   : >> { %723 = vst.msk [vmem:[#allocation2 + $0x50] sm:$0xff] %vm712_vm8, %v685_v12 }
 0x132   : >> { %v750_v14 = vpop.permute.xlu1 %749 }
 0x133   : >> { %789 = vst.msk [vmem:[#allocation2 + $0x48] sm:$0xff] %vm779_vm9, %v750_v14  ;;  %v748_v15 = vpop.permute.xlu0 %747 }
 0x134   : >> { %788 = vst.msk [vmem:[#allocation2 + $0x40] sm:$0xff] %vm779_vm9, %v748_v15 }
 0x136   : >> { %v754_v16 = vpop.permute.xlu1 %753 }
 0x137   : >> { %791 = vst.msk [vmem:[#allocation2 + $0x58] sm:$0xff] %vm779_vm9, %v754_v16  ;;  %v752_v17 = vpop.permute.xlu0 %751 }
 0x138   : >> { %790 = vst.msk [vmem:[#allocation2 + $0x50] sm:$0xff] %vm779_vm9, %v752_v17 }
 0x13a   : >> { %v821_v18 = vpop.permute.xlu1 %820 }
 0x13b   : >> { %860 = vst.msk [vmem:[#allocation2 + $0x48] sm:$0xff] %vm850_vm10, %v821_v18  ;;  %v819_v19 = vpop.permute.xlu0 %818 }
 0x13c   : >> { %859 = vst.msk [vmem:[#allocation2 + $0x40] sm:$0xff] %vm850_vm10, %v819_v19 }
 0x13e   : >> { %v825_v20 = vpop.permute.xlu1 %824 }
 0x13f   : >> { %862 = vst.msk [vmem:[#allocation2 + $0x58] sm:$0xff] %vm850_vm10, %v825_v20  ;;  %v823_v21 = vpop.permute.xlu0 %822 }
 0x140   : >> { %861 = vst.msk [vmem:[#allocation2 + $0x50] sm:$0xff] %vm850_vm10, %v823_v21 }
 0x142   : >> { %v891_v22 = vpop.permute.xlu1 %890 }
 0x143   : >> { %930 = vst.msk [vmem:[#allocation2 + $0x48] sm:$0xff] %vm920_vm11, %v891_v22  ;;  %v889_v23 = vpop.permute.xlu0 %888 }
 0x144   : >> { %929 = vst.msk [vmem:[#allocation2 + $0x40] sm:$0xff] %vm920_vm11, %v889_v23 }
 0x146   : >> { %v377_v24 = vpop.permute.xlu1 %376 }
 0x147   : >> { %412 = vst.msk [vmem:[#allocation2 + $0x68] sm:$0xff] %vm398_vm4, %v377_v24  ;;  %v375_v25 = vpop.permute.xlu0 %374 }
 0x148   : >> { %411 = vst.msk [vmem:[#allocation2 + $0x60] sm:$0xff] %vm398_vm4, %v375_v25 }
 0x14a   : >> { %v895_v42 = vpop.permute.xlu1 %894  ;;  %v946_v26 = vld [vmem:[#allocation2 + $0x48] sm:$0xff] }
 0x14b   : >> { %932 = vst.msk [vmem:[#allocation2 + $0x58] sm:$0xff] %vm920_vm11, %v895_v42  ;;  %v893_v27 = vpop.permute.xlu0 %892  ;;  %v945_v43 = vld [vmem:[#allocation2 + $0x40] sm:$0xff] }
 0x14c   : >> { %931 = vst.msk [vmem:[#allocation2 + $0x50] sm:$0xff] %vm920_vm11, %v893_v27  ;;  %v957_v30 = vpack.c.bf16 %v946_v26, %v945_v43 }
 0x14e   : >> { %1441 = vmatprep.mubr.msk.bf16.mxu0 %vm982_vm12, %v957_v30  ;;  %v381_v28 = vpop.permute.xlu1 %380 }
 0x14f   : >> { %414 = vst.msk [vmem:[#allocation2 + $0x78] sm:$0xff] %vm398_vm4, %v381_v28  ;;  %v379_v29 = vpop.permute.xlu0 %378 }
 0x150   : >> { %413 = vst.msk [vmem:[#allocation2 + $0x70] sm:$0xff] %vm398_vm4, %v379_v29 }
 0x152   : >> { %v483_v31 = vpop.permute.xlu1 %482  ;;  %v948_v34 = vld [vmem:[#allocation2 + $0x58] sm:$0xff] }
 0x153   : >> { %518 = vst.msk [vmem:[#allocation2 + $0x68] sm:$0xff] %vm504_vm5, %v483_v31  ;;  %v481_v35 = vpop.permute.xlu0 %480  ;;  %v947_v36 = vld [vmem:[#allocation2 + $0x50] sm:$0xff] }
 0x154   : >> { %517 = vst.msk [vmem:[#allocation2 + $0x60] sm:$0xff] %vm504_vm5, %v481_v35  ;;  %v958_v37 = vpack.c.bf16 %v948_v34, %v947_v36 }
 0x156   : >> { %1442 = vmatmul.mubr.msk.bf16.gmra.mrb[8].mxu0 %vm982_vm12, %v958_v37  ;;  %v487_v38 = vpop.permute.xlu1 %486 }
 0x157   : >> { %520 = vst.msk [vmem:[#allocation2 + $0x78] sm:$0xff] %vm504_vm5, %v487_v38  ;;  %v485_v39 = vpop.permute.xlu0 %484 }
 0x158   : >> { %519 = vst.msk [vmem:[#allocation2 + $0x70] sm:$0xff] %vm504_vm5, %v485_v39 }
 0x15a   : >> { %v550_v40 = vpop.permute.xlu1 %549 }
 0x15b   : >> { %585 = vst.msk [vmem:[#allocation2 + $0x68] sm:$0xff] %vm571_vm6, %v550_v40  ;;  %v548_v41 = vpop.permute.xlu0 %547 }
 0x15c   : >> { %584 = vst.msk [vmem:[#allocation2 + $0x60] sm:$0xff] %vm571_vm6, %v548_v41 }
 0x15e   : >> { %v554_v44 = vpop.permute.xlu1 %553 }
 0x15f   : >> { %587 = vst.msk [vmem:[#allocation2 + $0x78] sm:$0xff] %vm571_vm6, %v554_v44  ;;  %v552_v45 = vpop.permute.xlu0 %551  ;;  %v1610_v44 = vmov 0.0  }
 0x160   : >> { %586 = vst.msk [vmem:[#allocation2 + $0x70] sm:$0xff] %vm571_vm6, %v552_v45  ;;  %1481 = vmatprep.mubr.msk.f32.mxu1 %vm1609_vm13, %v1610_v44 }
 0x162   : >> { %v621_v46 = vpop.permute.xlu1 %620 }
 0x163   : >> { %656 = vst.msk [vmem:[#allocation2 + $0x68] sm:$0xff] %vm642_vm7, %v621_v46  ;;  %v619_v47 = vpop.permute.xlu0 %618 }
 0x164   : >> { %655 = vst.msk [vmem:[#allocation2 + $0x60] sm:$0xff] %vm642_vm7, %v619_v47 }
 0x166   : >> { %v625_v48 = vpop.permute.xlu1 %624 }
 0x167   : >> { %658 = vst.msk [vmem:[#allocation2 + $0x78] sm:$0xff] %vm642_vm7, %v625_v48  ;;  %v623_v49 = vpop.permute.xlu0 %622 }
 0x168   : >> { %657 = vst.msk [vmem:[#allocation2 + $0x70] sm:$0xff] %vm642_vm7, %v623_v49 }
 0x16a   : >> { %v691_v50 = vpop.permute.xlu1 %690 }
 0x16b   : >> { %726 = vst.msk [vmem:[#allocation2 + $0x68] sm:$0xff] %vm712_vm8, %v691_v50  ;;  %v689_v51 = vpop.permute.xlu0 %688 }
 0x16c   : >> { %725 = vst.msk [vmem:[#allocation2 + $0x60] sm:$0xff] %vm712_vm8, %v689_v51 }
 0x16e   : >> { %v695_v52 = vpop.permute.xlu1 %694 }
 0x16f   : >> { %728 = vst.msk [vmem:[#allocation2 + $0x78] sm:$0xff] %vm712_vm8, %v695_v52  ;;  %v693_v53 = vpop.permute.xlu0 %692 }
 0x170   : >> { %727 = vst.msk [vmem:[#allocation2 + $0x70] sm:$0xff] %vm712_vm8, %v693_v53 }
 0x172   : >> { %v758_v54 = vpop.permute.xlu1 %757 }
 0x173   : >> { %793 = vst.msk [vmem:[#allocation2 + $0x68] sm:$0xff] %vm779_vm9, %v758_v54  ;;  %v756_v57 = vpop.permute.xlu0 %755 }
 0x174   : >> { %792 = vst.msk [vmem:[#allocation2 + $0x60] sm:$0xff] %vm779_vm9, %v756_v57 }
 0x176   : >> { %v762_v58 = vpop.permute.xlu1 %761 }
 0x177   : >> { %795 = vst.msk [vmem:[#allocation2 + $0x78] sm:$0xff] %vm779_vm9, %v762_v58  ;;  %v760_v59 = vpop.permute.xlu0 %759 }
 0x178   : >> { %794 = vst.msk [vmem:[#allocation2 + $0x70] sm:$0xff] %vm779_vm9, %v760_v59 }
 0x17a   : >> { %v829_v60 = vpop.permute.xlu1 %828 }
 0x17b   : >> { %864 = vst.msk [vmem:[#allocation2 + $0x68] sm:$0xff] %vm850_vm10, %v829_v60  ;;  %v827_v61 = vpop.permute.xlu0 %826 }
 0x17c   : >> { %863 = vst.msk [vmem:[#allocation2 + $0x60] sm:$0xff] %vm850_vm10, %v827_v61 }
 0x17e   : >> { %v833_v32 = vpop.permute.xlu1 %832 }
 0x17f   : >> { %866 = vst.msk [vmem:[#allocation2 + $0x78] sm:$0xff] %vm850_vm10, %v833_v32  ;;  %v831_v62 = vpop.permute.xlu0 %830 }
 0x180   : >> { %865 = vst.msk [vmem:[#allocation2 + $0x70] sm:$0xff] %vm850_vm10, %v831_v62 }
 0x182   : >> { %v899_v63 = vpop.permute.xlu1 %898 }
 0x183   : >> { %934 = vst.msk [vmem:[#allocation2 + $0x68] sm:$0xff] %vm920_vm11, %v899_v63  ;;  %v897_v33 = vpop.permute.xlu0 %896 }
 0x184   : >> { %933 = vst.msk [vmem:[#allocation2 + $0x60] sm:$0xff] %vm920_vm11, %v897_v33 }
 0x186   : >> { %v903_v7 = vpop.permute.xlu1 %902 }
 0x187   : >> { %936 = vst.msk [vmem:[#allocation2 + $0x78] sm:$0xff] %vm920_vm11, %v903_v7  ;;  %v901_v8 = vpop.permute.xlu0 %900 }
 0x188   : >> { %935 = vst.msk [vmem:[#allocation2 + $0x70] sm:$0xff] %vm920_vm11, %v901_v8 }
 0x18a   : >> { %v950_v9 = vld [vmem:[#allocation2 + $0x68] sm:$0xff] }
 0x18b   : >> { %v949_v10 = vld [vmem:[#allocation2 + $0x60] sm:$0xff] }
 0x18c   : >> { %v959_v11 = vpack.c.bf16 %v950_v9, %v949_v10 }
 0x18e   : >> { %1445 = vmatprep.mubr.msk.bf16.mxu0 %vm982_vm12, %v959_v11  ;;  %v952_v55 = vld [vmem:[#allocation2 + $0x78] sm:$0xff] }
 0x18f   : >> { %v951_v56 = vld [vmem:[#allocation2 + $0x70] sm:$0xff] }
 0x190   : >> { %v960_v12 = vpack.c.bf16 %v952_v55, %v951_v56 }
 0x192   : >> { %1446 = vmatmul.mubr.msk.bf16.gmra.mrb[12].mxu0 %vm982_vm12, %v960_v12 }
 0x1a9   : >> { %v1435_v14 = vpop.f32.mrb[0].mxu0 }
 0x1aa   : >> { %v1054_v15 = vadd.f32 %v1435_v14, %v1682_v5  ;;  %v1045_v16 = vpop.f32.mrb[1].mxu0 }
 0x1ab   : >> { %v1046_v17 = vadd.f32 %v1682_v5, %v1045_v16  ;;  %v1436_v18 = vpop.f32.mrb[2].mxu0 }
 0x1ac   : >> { %v1057_v19 = vadd.f32 %v1436_v18, %v1682_v5  ;;  %v1048_v20 = vpop.f32.mrb[3].mxu0  ;;  %v1110_v22 = vmax.f32 %v1054_v15, 0.0  ;;  %v1611_v15 = vmov 1.0  }
 0x1ad   : >> { %v1049_v21 = vadd.f32 %v1682_v5, %v1048_v20  ;;  %v1108_v24 = vmax.f32 %v1046_v17, 0.0  ;;  %v1570_v20 = vld [vmem:[%s2276_s3 + $0x10] sm:$0xff] (%p230_p4)  }
 0x1ae   : >> { %v1111_v23 = vmax.f32 %v1057_v19, 0.0  ;;  %v1568_v19 = vld [vmem:[%s2276_s3] sm:$0xff] (%p230_p4)  }
 0x1af   : >> { %v1109_v25 = vmax.f32 %v1049_v21, 0.0 }
 0x1b0   : >> { %v1508_v42 = vpack.c.bf16 %v1111_v23, %v1110_v22  ;;  %v1213_v22 = vld [vmem:[%s2277_s4] sm:$0x1] (%p230_p4) }
 0x1b1   : >> { %v1505_v26 = vpack.c.bf16 %v1109_v25, %v1108_v24 }
 0x1b3   : >> { %1506 = vmatpush3.bf16.msra.mxu1 %v1505_v26 }
 0x1b4   : >> { %1507 = vmatprep.subr.bf16.mxu1 %v1608_v13 }
 0x1b7   : >> { %1509 = vmatpush3.bf16.msra.mxu1 %v1508_v42 }
 0x1b8   : >> { %1510 = vmatprep.subr.bf16.mxu1 %v1608_v13 }
 0x1e9   : >> { %v1439_v27 = vpop.f32.mrb[4].mxu0 }
 0x1ea   : >> { %v1070_v43 = vadd.f32 %v1439_v27, %v1682_v5  ;;  %v1061_v30 = vpop.f32.mrb[5].mxu0 }
 0x1eb   : >> { %v1062_v28 = vadd.f32 %v1682_v5, %v1061_v30  ;;  %v1440_v29 = vpop.f32.mrb[6].mxu0 }
 0x1ec   : >> { %v1073_v31 = vadd.f32 %v1440_v29, %v1682_v5  ;;  %v1064_v34 = vpop.f32.mrb[7].mxu0  ;;  %v1114_v36 = vmax.f32 %v1070_v43, 0.0 }
 0x1ed   : >> { %v1065_v35 = vadd.f32 %v1682_v5, %v1064_v34  ;;  %v1112_v38 = vmax.f32 %v1062_v28, 0.0 }
 0x1ee   : >> { %v1115_v37 = vmax.f32 %v1073_v31, 0.0 }
 0x1ef   : >> { %v1113_v39 = vmax.f32 %v1065_v35, 0.0 }
 0x1f0   : >> { %v1514_v40 = vpack.c.bf16 %v1115_v37, %v1114_v36 }
 0x1f1   : >> { %v1511_v41 = vpack.c.bf16 %v1113_v39, %v1112_v38 }
 0x1f3   : >> { %1512 = vmatpush3.bf16.msra.mxu1 %v1511_v41 }
 0x1f4   : >> { %1513 = vmatprep.subr.bf16.mxu1 %v1608_v13 }
 0x1f7   : >> { %1515 = vmatpush3.bf16.msra.mxu1 %v1514_v40 }
 0x1f8   : >> { %1516 = vmatprep.subr.bf16.mxu1 %v1608_v13 }
 0x229   : >> { %v1443_v45 = vpop.f32.mrb[8].mxu0 }
 0x22a   : >> { %v1086_v46 = vadd.f32 %v1443_v45, %v1682_v5  ;;  %v1077_v47 = vpop.f32.mrb[9].mxu0 }
 0x22b   : >> { %v1078_v48 = vadd.f32 %v1682_v5, %v1077_v47  ;;  %v1444_v49 = vpop.f32.mrb[10].mxu0 }
 0x22c   : >> { %v1089_v50 = vadd.f32 %v1444_v49, %v1682_v5  ;;  %v1080_v51 = vpop.f32.mrb[11].mxu0  ;;  %v1118_v53 = vmax.f32 %v1086_v46, 0.0 }
 0x22d   : >> { %v1081_v52 = vadd.f32 %v1682_v5, %v1080_v51  ;;  %v1116_v57 = vmax.f32 %v1078_v48, 0.0 }
 0x22e   : >> { %v1119_v54 = vmax.f32 %v1089_v50, 0.0 }
 0x22f   : >> { %v1117_v58 = vmax.f32 %v1081_v52, 0.0 }
 0x230   : >> { %v1520_v59 = vpack.c.bf16 %v1119_v54, %v1118_v53 }
 0x231   : >> { %v1517_v60 = vpack.c.bf16 %v1117_v58, %v1116_v57 }
 0x233   : >> { %1518 = vmatpush3.bf16.msra.mxu1 %v1517_v60 }
 0x234   : >> { %1519 = vmatprep.subr.bf16.mxu1 %v1608_v13 }
 0x237   : >> { %1521 = vmatpush3.bf16.msra.mxu1 %v1520_v59 }
 0x238   : >> { %1522 = vmatprep.subr.bf16.mxu1 %v1608_v13 }
 0x265   : >> { %v1447_v61 = vpop.f32.mrb[12].mxu0 }
 0x266   : >> { %v1102_v32 = vadd.f32 %v1447_v61, %v1682_v5  ;;  %v1093_v62 = vpop.f32.mrb[13].mxu0 }
 0x267   : >> { %v1094_v63 = vadd.f32 %v1682_v5, %v1093_v62  ;;  %v1448_v33 = vpop.f32.mrb[14].mxu0 }
 0x268   : >> { %v1105_v7 = vadd.f32 %v1448_v33, %v1682_v5  ;;  %v1096_v8 = vpop.f32.mrb[15].mxu0  ;;  %v1122_v10 = vmax.f32 %v1102_v32, 0.0 }
 0x269   : >> { %v1097_v9 = vadd.f32 %v1682_v5, %v1096_v8  ;;  %v1120_v55 = vmax.f32 %v1094_v63, 0.0  ;;  %v1575_v5 = vld [vmem:[%s2276_s3 + $0x38] sm:$0xff] (%p230_p4)  }
 0x26a   : >> { %v1123_v11 = vmax.f32 %v1105_v7, 0.0 }
 0x26b   : >> { %v1121_v56 = vmax.f32 %v1097_v9, 0.0 }
 0x26c   : >> { %v1526_v12 = vpack.c.bf16 %v1123_v11, %v1122_v10 }
 0x26d   : >> { %v1523_v14 = vpack.c.bf16 %v1121_v56, %v1120_v55 }
 0x26f   : >> { %1524 = vmatpush3.bf16.msra.mxu1 %v1523_v14 }
 0x270   : >> { %1525 = vmatprep.subr.bf16.mxu1 %v1608_v13  ;;  %v1612_v13 = vmov (%p230_p4), 0.0  }
 0x271   : > { %1484 = vmatprep.subr.bf16.mxu0 (%p230_p4), %v1612_v13  ;;  %1500 = vmatprep.mubr.msk.bf16.mxu0 (%p230_p4), %vm1613_vm14, %v1612_v13 }
 0x272   : > { %1485 = vmatpush3.bf16.msra.mxu0 (%p230_p4), %v1568_v19 }
 0x273   : >> { %1527 = vmatpush3.bf16.msra.mxu1 %v1526_v12  ;;  %1486 = vmatprep.subr.bf16.mxu0 (%p230_p4), %v1612_v13 }
 0x276   : >> { %1482 = vmatmul.mubr.f32.vlgmr.msra.gmra.mrb[0].mxu1 %v1611_v15 }
 0x346   : > { %232 = sbr.rel (!%p230_p4) target bundleno = 17 (0x11), region = 78 }
 0x349   : >> { %v1190_v16 = vpop.f32.mrb[0].mxu1 }
 0x34a   : >> { %v1194_v17 = vadd.f32 %v1594_v6, %v1190_v16   ;;  %v1483_v18 = vpop.f32.mrb[1].mxu1 }
 0x34c   : >> { %v2279_v6 = vmov %v1194_v17  ;;  %v1195_v4 = vmul.f32 (%p230_p4), 0.00390625, %v1194_v17 }
 0x34d   : > { %v1569_v6 = vld [vmem:[%s2276_s3 + $0x8] sm:$0xff]  }
 0x34e   : > { %1487 = vmatpush3.bf16.msra.mxu0 %v1569_v6  ;;  %v1196_v21 = vpack.c.bf16 %v1195_v4, %v1195_v4 }
 0x34f   : > { %1488 = vmatprep.subr.bf16.mxu0 %v1612_v13 }
 0x352   : > { %1489 = vmatpush3.bf16.msra.mxu0 %v1570_v20 }
 0x353   : > { %1490 = vmatprep.subr.bf16.mxu0 %v1612_v13 }
 0x356   : > { %1491 = vmatpush3.bf16.msra.mxu0 %v1571_v0 }
 0x357   : > { %1492 = vmatprep.subr.bf16.mxu0 %v1612_v13 }
 0x35a   : > { %1493 = vmatpush3.bf16.msra.mxu0 %v1572_v1 }
 0x35b   : > { %1494 = vmatprep.subr.bf16.mxu0 %v1612_v13 }
 0x35e   : > { %1495 = vmatpush3.bf16.msra.mxu0 %v1573_v2 }
 0x35f   : > { %1496 = vmatprep.subr.bf16.mxu0 %v1612_v13 }
 0x362   : > { %1497 = vmatpush3.bf16.msra.mxu0 %v1574_v3 }
 0x363   : > { %1498 = vmatprep.subr.bf16.mxu0 %v1612_v13 }
 0x366   : > { %1499 = vmatpush3.bf16.msra.mxu0 %v1575_v5 }
 0x369   : > { %1501 = vmatmul.mubr.bf16.vlgmr.msra.gmra.mrb[0].mxu0 %v1196_v21 }
 0x43c   : > { %v1296_v23 = vpop.f32.mrb[0].mxu0 }
 0x43d   : > { %v1297_v24 = vadd.f32 %v1296_v23, %v1213_v22  ;;  %v1502_v25 = vpop.f32.mrb[1].mxu0 }
 0x43e   : > { %v1299_v42 = vpop.f32.mrb[2].mxu0 }
 0x43f   : > { %1302 = vst [vmem:[%s220_s10] sm:$0x1] %v1297_v24  ;;  %v1503_v26 = vpop.f32.mrb[3].mxu0 }
 0x440 PF: > { %s15_s18 = sadd.s32 1, %s1590_s18  }
 0x441   : > { %p12_p5 = scmp.ge.s32.totalorder %s15_s18, 4  }
 0x443   :  { %14 = sbr.rel (!%p12_p5) target bundleno = 1 (0x1), region = 89 }

</bundles_post_ra>
